<compile_context>
chip_gen: v5e
topology: v5e:2x2
jax: 0.10.0
libtpu: 0.0.40
codegen_flags: <defaults>
</compile_context>

<pallas_src>
import jax
import jax.numpy as jnp
from jax import lax
from jax.experimental import pallas as pl
from jax.experimental.pallas import tpu as pltpu

INPUT_SIZE = 4
HIDDEN = 16


def lstm_mean_sigmoid_kernel(x_ref, wih_ref, whh_ref, b_ref, o_ref):
    # x_ref   : (I, T*B)   inputs, x_ref[i, t*B + b] = x[b, t, i]
    # wih_ref : (4H, I)    input-to-hidden weights (PyTorch layout)
    # whh_ref : (4H, H)    hidden-to-hidden weights (PyTorch layout)
    # b_ref   : (4H, 1)    combined bias (b_ih + b_hh)
    # o_ref   : (H, B)     sigmoid(mean_t(h_t)), batch on lanes
    H = whh_ref.shape[1]
    B = o_ref.shape[1]
    T = x_ref.shape[1] // B

    whh = whh_ref[...]

    # ---- Hoisted input projection: ONE MXU matmul for all timesteps (+ bias,
    #      broadcast exactly once), removed from the serial recurrence.
    px_all = (
        jnp.dot(wih_ref[...], x_ref[...], preferred_element_type=jnp.float32)
        + b_ref[...]
    )  # (4H, T*B); column t*B+b holds W_ih @ x[b, t] + b

    h = jnp.zeros((H, B), jnp.float32)
    c = jnp.zeros((H, B), jnp.float32)
    acc = jnp.zeros((H, B), jnp.float32)

    # ---- Fully unrolled recurrence (T static & small): per step only the
    #      hidden-to-hidden dot sits on the h -> h critical path.  Gate splits
    #      are 8-aligned sublane slices, no per-step lane shuffles.
    for t in range(T):
        gates = px_all[:, t * B:(t + 1) * B] + jnp.dot(
            whh, h, preferred_element_type=jnp.float32
        )  # (4H, B), PyTorch gate order [i, f, g, o] along sublanes
        i_g = jax.nn.sigmoid(gates[0 * H:1 * H, :])
        f_g = jax.nn.sigmoid(gates[1 * H:2 * H, :])
        g_g = jnp.tanh(gates[2 * H:3 * H, :])
        o_g = jax.nn.sigmoid(gates[3 * H:4 * H, :])
        c = f_g * c + i_g * g_g
        h = o_g * jnp.tanh(c)
        acc = acc + h

    o_ref[...] = jax.nn.sigmoid(acc * (1.0 / T))


@jax.jit
def rnn_net_forward(x_btI, wih, whh, b_ih, b_hh):
    """x_btI: (B, T, 4) float32, batch_first like PyTorch. Returns (B, 16)."""
    B, T, I = x_btI.shape
    assert I == INPUT_SIZE
    # (B, T, I) -> (I, T*B): lets the kernel do the whole input projection as a
    # single matmul and keeps the long axis on lanes (no 4-wide trailing dim).
    x_r = jnp.transpose(x_btI.astype(jnp.float32), (2, 1, 0)).reshape(I, T * B)
    bias = (b_ih + b_hh).astype(jnp.float32).reshape(4 * HIDDEN, 1)

    out_hb = pl.pallas_call(
        lstm_mean_sigmoid_kernel,
        out_shape=jax.ShapeDtypeStruct((HIDDEN, B), jnp.float32),
        in_specs=[
            pl.BlockSpec(memory_space=pltpu.MemorySpace.VMEM),
            pl.BlockSpec(memory_space=pltpu.MemorySpace.VMEM),
            pl.BlockSpec(memory_space=pltpu.MemorySpace.VMEM),
            pl.BlockSpec(memory_space=pltpu.MemorySpace.VMEM),
        ],
        out_specs=pl.BlockSpec(memory_space=pltpu.MemorySpace.VMEM),
    )(x_r, wih.astype(jnp.float32), whh.astype(jnp.float32), bias)
    # TODO(synk): at large B, block the batch with a grid axis marked
    # "parallel" (v7x megacore / VMEM blocking) instead of one gridless call.
    return out_hb.T  # (B, H)


def rnn_net_reference(x, wih, whh, b_ih, b_hh):
    """Pure-JAX reference mirroring PyTorch nn.LSTM + mean(dim=1) + sigmoid."""
    B, T, _ = x.shape
    H = HIDDEN

    def step(carry, x_t):
        h, c = carry
        gates = x_t @ wih.T + h @ whh.T + b_ih + b_hh
        i = jax.nn.sigmoid(gates[:, 0 * H:1 * H])
        f = jax.nn.sigmoid(gates[:, 1 * H:2 * H])
        g = jnp.tanh(gates[:, 2 * H:3 * H])
        o = jax.nn.sigmoid(gates[:, 3 * H:4 * H])
        c = f * c + i * g
        h = o * jnp.tanh(c)
        return (h, c), h

    xs = jnp.transpose(x, (1, 0, 2))  # (T, B, I)
    init = (jnp.zeros((B, H), jnp.float32), jnp.zeros((B, H), jnp.float32))
    _, hs = lax.scan(step, init, xs)
    return jax.nn.sigmoid(jnp.mean(hs, axis=0))


def init_params(key):
    """PyTorch nn.LSTM default init: U(-1/sqrt(H), 1/sqrt(H))."""
    k1, k2, k3, k4 = jax.random.split(key, 4)
    bound = 1.0 / jnp.sqrt(HIDDEN)
    wih = jax.random.uniform(k1, (4 * HIDDEN, INPUT_SIZE), jnp.float32, -bound, bound)
    whh = jax.random.uniform(k2, (4 * HIDDEN, HIDDEN), jnp.float32, -bound, bound)
    b_ih = jax.random.uniform(k3, (4 * HIDDEN,), jnp.float32, -bound, bound)
    b_hh = jax.random.uniform(k4, (4 * HIDDEN,), jnp.float32, -bound, bound)
    return wih, whh, b_ih, b_hh


if __name__ == "__main__":
    key = jax.random.PRNGKey(0)
    k_x, k_p = jax.random.split(key)

    B, T = 2, 8
    x = jax.random.normal(k_x, (B, T, INPUT_SIZE), jnp.float32)
    wih, whh, b_ih, b_hh = init_params(k_p)

    out = jax.block_until_ready(rnn_net_forward(x, wih, whh, b_ih, b_hh))
    ref = jax.block_until_ready(rnn_net_reference(x, wih, whh, b_ih, b_hh))

    assert out.shape == (B, HIDDEN)
    assert bool(jnp.all(jnp.isfinite(out)))
    assert bool(jnp.allclose(out, ref, atol=2e-3, rtol=2e-3)), (
        f"max abs err {float(jnp.max(jnp.abs(out - ref)))}"
    )
    print("KERNEL_OK")
</pallas_src>

<mosaic_0001>
module attributes {stable_mosaic.version = 11 : i64} {
  func.func @lstm_mean_sigmoid_kernel(%arg0: memref<4x16xf32, #tpu.memory_space<vmem>>, %arg1: memref<64x4xf32, #tpu.memory_space<vmem>>, %arg2: memref<64x16xf32, #tpu.memory_space<vmem>>, %arg3: memref<64x1xf32, #tpu.memory_space<vmem>>, %arg4: memref<16x2xf32, #tpu.memory_space<vmem>>) attributes {dimension_semantics = [], scalar_prefetch = 0 : i64, scratch_operands = 0 : i64, tpu.core_type = #tpu.core_type<tc>} {
    %c0 = arith.constant 0 : index
    %c0_0 = arith.constant 0 : index
    %0 = vector.load %arg2[%c0, %c0_0] : memref<64x16xf32, #tpu.memory_space<vmem>>, vector<64x16xf32>
    %c0_1 = arith.constant 0 : index
    %c0_2 = arith.constant 0 : index
    %1 = vector.load %arg1[%c0_1, %c0_2] : memref<64x4xf32, #tpu.memory_space<vmem>>, vector<64x4xf32>
    %c0_3 = arith.constant 0 : index
    %c0_4 = arith.constant 0 : index
    %2 = vector.load %arg0[%c0_3, %c0_4] : memref<4x16xf32, #tpu.memory_space<vmem>>, vector<4x16xf32>
    %cst = arith.constant dense<0.000000e+00> : vector<64x16xf32>
    %3 = tpu.matmul %1, %2, %cst {dimension_numbers = #tpu.dot_dimension_numbers<[1], [0], [0], [1], [0, 0, 1, 1], [], []>} : vector<64x4xf32>, vector<4x16xf32>, vector<64x16xf32> -> vector<64x16xf32>
    %c0_5 = arith.constant 0 : index
    %c0_6 = arith.constant 0 : index
    %4 = vector.load %arg3[%c0_5, %c0_6] : memref<64x1xf32, #tpu.memory_space<vmem>>, vector<64x1xf32>
    %5 = vector.broadcast %4 : vector<64x1xf32> to vector<64x16xf32>
    %6 = arith.addf %3, %5 : vector<64x16xf32>
    %cst_7 = arith.constant 0.000000e+00 : f32
    %7 = vector.broadcast %cst_7 : f32 to vector<16x2xf32>
    %cst_8 = arith.constant 0.000000e+00 : f32
    %8 = vector.broadcast %cst_8 : f32 to vector<16x2xf32>
    %cst_9 = arith.constant 0.000000e+00 : f32
    %9 = vector.broadcast %cst_9 : f32 to vector<16x2xf32>
    %10 = vector.extract_strided_slice %6 {offsets = [0, 0], sizes = [64, 2], strides = [1, 1]} : vector<64x16xf32> to vector<64x2xf32>
    %cst_10 = arith.constant dense<0.000000e+00> : vector<64x2xf32>
    %11 = tpu.matmul %0, %7, %cst_10 {dimension_numbers = #tpu.dot_dimension_numbers<[1], [0], [0], [1], [0, 0, 1, 1], [], []>} : vector<64x16xf32>, vector<16x2xf32>, vector<64x2xf32> -> vector<64x2xf32>
    %12 = arith.addf %10, %11 : vector<64x2xf32>
    %13 = vector.extract_strided_slice %12 {offsets = [0, 0], sizes = [16, 2], strides = [1, 1]} : vector<64x2xf32> to vector<16x2xf32>
    %14 = arith.negf %13 : vector<16x2xf32>
    %15 = math.exp %14 : vector<16x2xf32>
    %cst_11 = arith.constant 1.000000e+00 : f32
    %16 = vector.broadcast %cst_11 : f32 to vector<16x2xf32>
    %17 = arith.addf %16, %15 : vector<16x2xf32>
    %18 = arith.divf %16, %17 : vector<16x2xf32>
    %19 = vector.extract_strided_slice %12 {offsets = [16, 0], sizes = [16, 2], strides = [1, 1]} : vector<64x2xf32> to vector<16x2xf32>
    %20 = arith.negf %19 : vector<16x2xf32>
    %21 = math.exp %20 : vector<16x2xf32>
    %cst_12 = arith.constant 1.000000e+00 : f32
    %22 = vector.broadcast %cst_12 : f32 to vector<16x2xf32>
    %23 = arith.addf %22, %21 : vector<16x2xf32>
    %24 = arith.divf %22, %23 : vector<16x2xf32>
    %25 = vector.extract_strided_slice %12 {offsets = [32, 0], sizes = [16, 2], strides = [1, 1]} : vector<64x2xf32> to vector<16x2xf32>
    %26 = math.tanh %25 : vector<16x2xf32>
    %27 = vector.extract_strided_slice %12 {offsets = [48, 0], sizes = [16, 2], strides = [1, 1]} : vector<64x2xf32> to vector<16x2xf32>
    %28 = arith.negf %27 : vector<16x2xf32>
    %29 = math.exp %28 : vector<16x2xf32>
    %cst_13 = arith.constant 1.000000e+00 : f32
    %30 = vector.broadcast %cst_13 : f32 to vector<16x2xf32>
    %31 = arith.addf %30, %29 : vector<16x2xf32>
    %32 = arith.divf %30, %31 : vector<16x2xf32>
    %33 = arith.mulf %24, %8 : vector<16x2xf32>
    %34 = arith.mulf %18, %26 : vector<16x2xf32>
    %35 = arith.addf %33, %34 : vector<16x2xf32>
    %36 = math.tanh %35 : vector<16x2xf32>
    %37 = arith.mulf %32, %36 : vector<16x2xf32>
    %38 = arith.addf %9, %37 : vector<16x2xf32>
    %39 = vector.extract_strided_slice %6 {offsets = [0, 2], sizes = [64, 2], strides = [1, 1]} : vector<64x16xf32> to vector<64x2xf32>
    %cst_14 = arith.constant dense<0.000000e+00> : vector<64x2xf32>
    %40 = tpu.matmul %0, %37, %cst_14 {dimension_numbers = #tpu.dot_dimension_numbers<[1], [0], [0], [1], [0, 0, 1, 1], [], []>} : vector<64x16xf32>, vector<16x2xf32>, vector<64x2xf32> -> vector<64x2xf32>
    %41 = arith.addf %39, %40 : vector<64x2xf32>
    %42 = vector.extract_strided_slice %41 {offsets = [0, 0], sizes = [16, 2], strides = [1, 1]} : vector<64x2xf32> to vector<16x2xf32>
    %43 = arith.negf %42 : vector<16x2xf32>
    %44 = math.exp %43 : vector<16x2xf32>
    %cst_15 = arith.constant 1.000000e+00 : f32
    %45 = vector.broadcast %cst_15 : f32 to vector<16x2xf32>
    %46 = arith.addf %45, %44 : vector<16x2xf32>
    %47 = arith.divf %45, %46 : vector<16x2xf32>
    %48 = vector.extract_strided_slice %41 {offsets = [16, 0], sizes = [16, 2], strides = [1, 1]} : vector<64x2xf32> to vector<16x2xf32>
    %49 = arith.negf %48 : vector<16x2xf32>
    %50 = math.exp %49 : vector<16x2xf32>
    %cst_16 = arith.constant 1.000000e+00 : f32
    %51 = vector.broadcast %cst_16 : f32 to vector<16x2xf32>
    %52 = arith.addf %51, %50 : vector<16x2xf32>
    %53 = arith.divf %51, %52 : vector<16x2xf32>
    %54 = vector.extract_strided_slice %41 {offsets = [32, 0], sizes = [16, 2], strides = [1, 1]} : vector<64x2xf32> to vector<16x2xf32>
    %55 = math.tanh %54 : vector<16x2xf32>
    %56 = vector.extract_strided_slice %41 {offsets = [48, 0], sizes = [16, 2], strides = [1, 1]} : vector<64x2xf32> to vector<16x2xf32>
    %57 = arith.negf %56 : vector<16x2xf32>
    %58 = math.exp %57 : vector<16x2xf32>
    %cst_17 = arith.constant 1.000000e+00 : f32
    %59 = vector.broadcast %cst_17 : f32 to vector<16x2xf32>
    %60 = arith.addf %59, %58 : vector<16x2xf32>
    %61 = arith.divf %59, %60 : vector<16x2xf32>
    %62 = arith.mulf %53, %35 : vector<16x2xf32>
    %63 = arith.mulf %47, %55 : vector<16x2xf32>
    %64 = arith.addf %62, %63 : vector<16x2xf32>
    %65 = math.tanh %64 : vector<16x2xf32>
    %66 = arith.mulf %61, %65 : vector<16x2xf32>
    %67 = arith.addf %38, %66 : vector<16x2xf32>
    %68 = vector.extract_strided_slice %6 {offsets = [0, 4], sizes = [64, 2], strides = [1, 1]} : vector<64x16xf32> to vector<64x2xf32>
    %cst_18 = arith.constant dense<0.000000e+00> : vector<64x2xf32>
    %69 = tpu.matmul %0, %66, %cst_18 {dimension_numbers = #tpu.dot_dimension_numbers<[1], [0], [0], [1], [0, 0, 1, 1], [], []>} : vector<64x16xf32>, vector<16x2xf32>, vector<64x2xf32> -> vector<64x2xf32>
    %70 = arith.addf %68, %69 : vector<64x2xf32>
    %71 = vector.extract_strided_slice %70 {offsets = [0, 0], sizes = [16, 2], strides = [1, 1]} : vector<64x2xf32> to vector<16x2xf32>
    %72 = arith.negf %71 : vector<16x2xf32>
    %73 = math.exp %72 : vector<16x2xf32>
    %cst_19 = arith.constant 1.000000e+00 : f32
    %74 = vector.broadcast %cst_19 : f32 to vector<16x2xf32>
    %75 = arith.addf %74, %73 : vector<16x2xf32>
    %76 = arith.divf %74, %75 : vector<16x2xf32>
    %77 = vector.extract_strided_slice %70 {offsets = [16, 0], sizes = [16, 2], strides = [1, 1]} : vector<64x2xf32> to vector<16x2xf32>
    %78 = arith.negf %77 : vector<16x2xf32>
    %79 = math.exp %78 : vector<16x2xf32>
    %cst_20 = arith.constant 1.000000e+00 : f32
    %80 = vector.broadcast %cst_20 : f32 to vector<16x2xf32>
    %81 = arith.addf %80, %79 : vector<16x2xf32>
    %82 = arith.divf %80, %81 : vector<16x2xf32>
    %83 = vector.extract_strided_slice %70 {offsets = [32, 0], sizes = [16, 2], strides = [1, 1]} : vector<64x2xf32> to vector<16x2xf32>
    %84 = math.tanh %83 : vector<16x2xf32>
    %85 = vector.extract_strided_slice %70 {offsets = [48, 0], sizes = [16, 2], strides = [1, 1]} : vector<64x2xf32> to vector<16x2xf32>
    %86 = arith.negf %85 : vector<16x2xf32>
    %87 = math.exp %86 : vector<16x2xf32>
    %cst_21 = arith.constant 1.000000e+00 : f32
    %88 = vector.broadcast %cst_21 : f32 to vector<16x2xf32>
    %89 = arith.addf %88, %87 : vector<16x2xf32>
    %90 = arith.divf %88, %89 : vector<16x2xf32>
    %91 = arith.mulf %82, %64 : vector<16x2xf32>
    %92 = arith.mulf %76, %84 : vector<16x2xf32>
    %93 = arith.addf %91, %92 : vector<16x2xf32>
    %94 = math.tanh %93 : vector<16x2xf32>
    %95 = arith.mulf %90, %94 : vector<16x2xf32>
    %96 = arith.addf %67, %95 : vector<16x2xf32>
    %97 = vector.extract_strided_slice %6 {offsets = [0, 6], sizes = [64, 2], strides = [1, 1]} : vector<64x16xf32> to vector<64x2xf32>
    %cst_22 = arith.constant dense<0.000000e+00> : vector<64x2xf32>
    %98 = tpu.matmul %0, %95, %cst_22 {dimension_numbers = #tpu.dot_dimension_numbers<[1], [0], [0], [1], [0, 0, 1, 1], [], []>} : vector<64x16xf32>, vector<16x2xf32>, vector<64x2xf32> -> vector<64x2xf32>
    %99 = arith.addf %97, %98 : vector<64x2xf32>
    %100 = vector.extract_strided_slice %99 {offsets = [0, 0], sizes = [16, 2], strides = [1, 1]} : vector<64x2xf32> to vector<16x2xf32>
    %101 = arith.negf %100 : vector<16x2xf32>
    %102 = math.exp %101 : vector<16x2xf32>
    %cst_23 = arith.constant 1.000000e+00 : f32
    %103 = vector.broadcast %cst_23 : f32 to vector<16x2xf32>
    %104 = arith.addf %103, %102 : vector<16x2xf32>
    %105 = arith.divf %103, %104 : vector<16x2xf32>
    %106 = vector.extract_strided_slice %99 {offsets = [16, 0], sizes = [16, 2], strides = [1, 1]} : vector<64x2xf32> to vector<16x2xf32>
    %107 = arith.negf %106 : vector<16x2xf32>
    %108 = math.exp %107 : vector<16x2xf32>
    %cst_24 = arith.constant 1.000000e+00 : f32
    %109 = vector.broadcast %cst_24 : f32 to vector<16x2xf32>
    %110 = arith.addf %109, %108 : vector<16x2xf32>
    %111 = arith.divf %109, %110 : vector<16x2xf32>
    %112 = vector.extract_strided_slice %99 {offsets = [32, 0], sizes = [16, 2], strides = [1, 1]} : vector<64x2xf32> to vector<16x2xf32>
    %113 = math.tanh %112 : vector<16x2xf32>
    %114 = vector.extract_strided_slice %99 {offsets = [48, 0], sizes = [16, 2], strides = [1, 1]} : vector<64x2xf32> to vector<16x2xf32>
    %115 = arith.negf %114 : vector<16x2xf32>
    %116 = math.exp %115 : vector<16x2xf32>
    %cst_25 = arith.constant 1.000000e+00 : f32
    %117 = vector.broadcast %cst_25 : f32 to vector<16x2xf32>
    %118 = arith.addf %117, %116 : vector<16x2xf32>
    %119 = arith.divf %117, %118 : vector<16x2xf32>
    %120 = arith.mulf %111, %93 : vector<16x2xf32>
    %121 = arith.mulf %105, %113 : vector<16x2xf32>
    %122 = arith.addf %120, %121 : vector<16x2xf32>
    %123 = math.tanh %122 : vector<16x2xf32>
    %124 = arith.mulf %119, %123 : vector<16x2xf32>
    %125 = arith.addf %96, %124 : vector<16x2xf32>
    %126 = vector.extract_strided_slice %6 {offsets = [0, 8], sizes = [64, 2], strides = [1, 1]} : vector<64x16xf32> to vector<64x2xf32>
    %cst_26 = arith.constant dense<0.000000e+00> : vector<64x2xf32>
    %127 = tpu.matmul %0, %124, %cst_26 {dimension_numbers = #tpu.dot_dimension_numbers<[1], [0], [0], [1], [0, 0, 1, 1], [], []>} : vector<64x16xf32>, vector<16x2xf32>, vector<64x2xf32> -> vector<64x2xf32>
    %128 = arith.addf %126, %127 : vector<64x2xf32>
    %129 = vector.extract_strided_slice %128 {offsets = [0, 0], sizes = [16, 2], strides = [1, 1]} : vector<64x2xf32> to vector<16x2xf32>
    %130 = arith.negf %129 : vector<16x2xf32>
    %131 = math.exp %130 : vector<16x2xf32>
    %cst_27 = arith.constant 1.000000e+00 : f32
    %132 = vector.broadcast %cst_27 : f32 to vector<16x2xf32>
    %133 = arith.addf %132, %131 : vector<16x2xf32>
    %134 = arith.divf %132, %133 : vector<16x2xf32>
    %135 = vector.extract_strided_slice %128 {offsets = [16, 0], sizes = [16, 2], strides = [1, 1]} : vector<64x2xf32> to vector<16x2xf32>
    %136 = arith.negf %135 : vector<16x2xf32>
    %137 = math.exp %136 : vector<16x2xf32>
    %cst_28 = arith.constant 1.000000e+00 : f32
    %138 = vector.broadcast %cst_28 : f32 to vector<16x2xf32>
    %139 = arith.addf %138, %137 : vector<16x2xf32>
    %140 = arith.divf %138, %139 : vector<16x2xf32>
    %141 = vector.extract_strided_slice %128 {offsets = [32, 0], sizes = [16, 2], strides = [1, 1]} : vector<64x2xf32> to vector<16x2xf32>
    %142 = math.tanh %141 : vector<16x2xf32>
    %143 = vector.extract_strided_slice %128 {offsets = [48, 0], sizes = [16, 2], strides = [1, 1]} : vector<64x2xf32> to vector<16x2xf32>
    %144 = arith.negf %143 : vector<16x2xf32>
    %145 = math.exp %144 : vector<16x2xf32>
    %cst_29 = arith.constant 1.000000e+00 : f32
    %146 = vector.broadcast %cst_29 : f32 to vector<16x2xf32>
    %147 = arith.addf %146, %145 : vector<16x2xf32>
    %148 = arith.divf %146, %147 : vector<16x2xf32>
    %149 = arith.mulf %140, %122 : vector<16x2xf32>
    %150 = arith.mulf %134, %142 : vector<16x2xf32>
    %151 = arith.addf %149, %150 : vector<16x2xf32>
    %152 = math.tanh %151 : vector<16x2xf32>
    %153 = arith.mulf %148, %152 : vector<16x2xf32>
    %154 = arith.addf %125, %153 : vector<16x2xf32>
    %155 = vector.extract_strided_slice %6 {offsets = [0, 10], sizes = [64, 2], strides = [1, 1]} : vector<64x16xf32> to vector<64x2xf32>
    %cst_30 = arith.constant dense<0.000000e+00> : vector<64x2xf32>
    %156 = tpu.matmul %0, %153, %cst_30 {dimension_numbers = #tpu.dot_dimension_numbers<[1], [0], [0], [1], [0, 0, 1, 1], [], []>} : vector<64x16xf32>, vector<16x2xf32>, vector<64x2xf32> -> vector<64x2xf32>
    %157 = arith.addf %155, %156 : vector<64x2xf32>
    %158 = vector.extract_strided_slice %157 {offsets = [0, 0], sizes = [16, 2], strides = [1, 1]} : vector<64x2xf32> to vector<16x2xf32>
    %159 = arith.negf %158 : vector<16x2xf32>
    %160 = math.exp %159 : vector<16x2xf32>
    %cst_31 = arith.constant 1.000000e+00 : f32
    %161 = vector.broadcast %cst_31 : f32 to vector<16x2xf32>
    %162 = arith.addf %161, %160 : vector<16x2xf32>
    %163 = arith.divf %161, %162 : vector<16x2xf32>
    %164 = vector.extract_strided_slice %157 {offsets = [16, 0], sizes = [16, 2], strides = [1, 1]} : vector<64x2xf32> to vector<16x2xf32>
    %165 = arith.negf %164 : vector<16x2xf32>
    %166 = math.exp %165 : vector<16x2xf32>
    %cst_32 = arith.constant 1.000000e+00 : f32
    %167 = vector.broadcast %cst_32 : f32 to vector<16x2xf32>
    %168 = arith.addf %167, %166 : vector<16x2xf32>
    %169 = arith.divf %167, %168 : vector<16x2xf32>
    %170 = vector.extract_strided_slice %157 {offsets = [32, 0], sizes = [16, 2], strides = [1, 1]} : vector<64x2xf32> to vector<16x2xf32>
    %171 = math.tanh %170 : vector<16x2xf32>
    %172 = vector.extract_strided_slice %157 {offsets = [48, 0], sizes = [16, 2], strides = [1, 1]} : vector<64x2xf32> to vector<16x2xf32>
    %173 = arith.negf %172 : vector<16x2xf32>
    %174 = math.exp %173 : vector<16x2xf32>
    %cst_33 = arith.constant 1.000000e+00 : f32
    %175 = vector.broadcast %cst_33 : f32 to vector<16x2xf32>
    %176 = arith.addf %175, %174 : vector<16x2xf32>
    %177 = arith.divf %175, %176 : vector<16x2xf32>
    %178 = arith.mulf %169, %151 : vector<16x2xf32>
    %179 = arith.mulf %163, %171 : vector<16x2xf32>
    %180 = arith.addf %178, %179 : vector<16x2xf32>
    %181 = math.tanh %180 : vector<16x2xf32>
    %182 = arith.mulf %177, %181 : vector<16x2xf32>
    %183 = arith.addf %154, %182 : vector<16x2xf32>
    %184 = vector.extract_strided_slice %6 {offsets = [0, 12], sizes = [64, 2], strides = [1, 1]} : vector<64x16xf32> to vector<64x2xf32>
    %cst_34 = arith.constant dense<0.000000e+00> : vector<64x2xf32>
    %185 = tpu.matmul %0, %182, %cst_34 {dimension_numbers = #tpu.dot_dimension_numbers<[1], [0], [0], [1], [0, 0, 1, 1], [], []>} : vector<64x16xf32>, vector<16x2xf32>, vector<64x2xf32> -> vector<64x2xf32>
    %186 = arith.addf %184, %185 : vector<64x2xf32>
    %187 = vector.extract_strided_slice %186 {offsets = [0, 0], sizes = [16, 2], strides = [1, 1]} : vector<64x2xf32> to vector<16x2xf32>
    %188 = arith.negf %187 : vector<16x2xf32>
    %189 = math.exp %188 : vector<16x2xf32>
    %cst_35 = arith.constant 1.000000e+00 : f32
    %190 = vector.broadcast %cst_35 : f32 to vector<16x2xf32>
    %191 = arith.addf %190, %189 : vector<16x2xf32>
    %192 = arith.divf %190, %191 : vector<16x2xf32>
    %193 = vector.extract_strided_slice %186 {offsets = [16, 0], sizes = [16, 2], strides = [1, 1]} : vector<64x2xf32> to vector<16x2xf32>
    %194 = arith.negf %193 : vector<16x2xf32>
    %195 = math.exp %194 : vector<16x2xf32>
    %cst_36 = arith.constant 1.000000e+00 : f32
    %196 = vector.broadcast %cst_36 : f32 to vector<16x2xf32>
    %197 = arith.addf %196, %195 : vector<16x2xf32>
    %198 = arith.divf %196, %197 : vector<16x2xf32>
    %199 = vector.extract_strided_slice %186 {offsets = [32, 0], sizes = [16, 2], strides = [1, 1]} : vector<64x2xf32> to vector<16x2xf32>
    %200 = math.tanh %199 : vector<16x2xf32>
    %201 = vector.extract_strided_slice %186 {offsets = [48, 0], sizes = [16, 2], strides = [1, 1]} : vector<64x2xf32> to vector<16x2xf32>
    %202 = arith.negf %201 : vector<16x2xf32>
    %203 = math.exp %202 : vector<16x2xf32>
    %cst_37 = arith.constant 1.000000e+00 : f32
    %204 = vector.broadcast %cst_37 : f32 to vector<16x2xf32>
    %205 = arith.addf %204, %203 : vector<16x2xf32>
    %206 = arith.divf %204, %205 : vector<16x2xf32>
    %207 = arith.mulf %198, %180 : vector<16x2xf32>
    %208 = arith.mulf %192, %200 : vector<16x2xf32>
    %209 = arith.addf %207, %208 : vector<16x2xf32>
    %210 = math.tanh %209 : vector<16x2xf32>
    %211 = arith.mulf %206, %210 : vector<16x2xf32>
    %212 = arith.addf %183, %211 : vector<16x2xf32>
    %213 = vector.extract_strided_slice %6 {offsets = [0, 14], sizes = [64, 2], strides = [1, 1]} : vector<64x16xf32> to vector<64x2xf32>
    %cst_38 = arith.constant dense<0.000000e+00> : vector<64x2xf32>
    %214 = tpu.matmul %0, %211, %cst_38 {dimension_numbers = #tpu.dot_dimension_numbers<[1], [0], [0], [1], [0, 0, 1, 1], [], []>} : vector<64x16xf32>, vector<16x2xf32>, vector<64x2xf32> -> vector<64x2xf32>
    %215 = arith.addf %213, %214 : vector<64x2xf32>
    %216 = vector.extract_strided_slice %215 {offsets = [0, 0], sizes = [16, 2], strides = [1, 1]} : vector<64x2xf32> to vector<16x2xf32>
    %217 = arith.negf %216 : vector<16x2xf32>
    %218 = math.exp %217 : vector<16x2xf32>
    %cst_39 = arith.constant 1.000000e+00 : f32
    %219 = vector.broadcast %cst_39 : f32 to vector<16x2xf32>
    %220 = arith.addf %219, %218 : vector<16x2xf32>
    %221 = arith.divf %219, %220 : vector<16x2xf32>
    %222 = vector.extract_strided_slice %215 {offsets = [16, 0], sizes = [16, 2], strides = [1, 1]} : vector<64x2xf32> to vector<16x2xf32>
    %223 = arith.negf %222 : vector<16x2xf32>
    %224 = math.exp %223 : vector<16x2xf32>
    %cst_40 = arith.constant 1.000000e+00 : f32
    %225 = vector.broadcast %cst_40 : f32 to vector<16x2xf32>
    %226 = arith.addf %225, %224 : vector<16x2xf32>
    %227 = arith.divf %225, %226 : vector<16x2xf32>
    %228 = vector.extract_strided_slice %215 {offsets = [32, 0], sizes = [16, 2], strides = [1, 1]} : vector<64x2xf32> to vector<16x2xf32>
    %229 = math.tanh %228 : vector<16x2xf32>
    %230 = vector.extract_strided_slice %215 {offsets = [48, 0], sizes = [16, 2], strides = [1, 1]} : vector<64x2xf32> to vector<16x2xf32>
    %231 = arith.negf %230 : vector<16x2xf32>
    %232 = math.exp %231 : vector<16x2xf32>
    %cst_41 = arith.constant 1.000000e+00 : f32
    %233 = vector.broadcast %cst_41 : f32 to vector<16x2xf32>
    %234 = arith.addf %233, %232 : vector<16x2xf32>
    %235 = arith.divf %233, %234 : vector<16x2xf32>
    %236 = arith.mulf %227, %209 : vector<16x2xf32>
    %237 = arith.mulf %221, %229 : vector<16x2xf32>
    %238 = arith.addf %236, %237 : vector<16x2xf32>
    %239 = math.tanh %238 : vector<16x2xf32>
    %240 = arith.mulf %235, %239 : vector<16x2xf32>
    %241 = arith.addf %212, %240 : vector<16x2xf32>
    %cst_42 = arith.constant 1.250000e-01 : f32
    %242 = vector.broadcast %cst_42 : f32 to vector<16x2xf32>
    %243 = arith.mulf %241, %242 : vector<16x2xf32>
    %244 = arith.negf %243 : vector<16x2xf32>
    %245 = math.exp %244 : vector<16x2xf32>
    %cst_43 = arith.constant 1.000000e+00 : f32
    %246 = vector.broadcast %cst_43 : f32 to vector<16x2xf32>
    %247 = arith.addf %246, %245 : vector<16x2xf32>
    %248 = arith.divf %246, %247 : vector<16x2xf32>
    %c0_44 = arith.constant 0 : index
    %c0_45 = arith.constant 0 : index
    %249 = vector.load %arg4[%c0_44, %c0_45] : memref<16x2xf32, #tpu.memory_space<vmem>>, vector<16x2xf32>
    tpu.vector_store %arg4[%c0_44, %c0_45], %248 {strides = array<i32>} : memref<16x2xf32, #tpu.memory_space<vmem>>, vector<16x2xf32>,
    return
  }
}

</mosaic_0001>

<bundles_post_ra>
// kernel: rnn_net_forward.1
= control target key start
LH: loop header
LB: loop body
LE: loop exit
PB: predicated region body
PF: predicated region fallthrough
CT: control target
= control target key end

     0   :  { %vm107_vm0 = vcmask 1043456   ;;  %vm82_vm1 = vcmask 31744   ;;  %v2401_v2 = vmov 0   ;;  %v2402_v6 = vmov 0.0   ;;  %s2403_s9 = smov 2   ;;  %s2404_s10 = smov 126   ;;  %s3681_s0 = inlined_call_operand.vmem [shape: f32[4,16], index: 0, kind: input, shape index: {}]   ;;  %s3682_s1 = inlined_call_operand.vmem [shape: f32[64,4], index: 1, kind: input, shape index: {}]   ;;  %s3683_s3 = inlined_call_operand.vmem [shape: f32[64,1], index: 3, kind: input, shape index: {}]   ;;  %s3684_s2 = inlined_call_operand.vmem [shape: f32[64,16], index: 2, kind: input, shape index: {}]   ;;  %s3685_s4 = inlined_call_operand.vmem [shape: f32[16,2], index: 4, kind: output, shape index: {}]  }
   0x1   :  { %v33_v0 = vld [vmem:[%s3681_s0] sm:$0xf]  ;;  %v27_v1 = vld [vmem:[%s3682_s1 + $0x10] sm:$0xff]  ;;  %2119 = vset.pattern.permute.xlu1 %v2401_v2  ;;  %2118 = vset.pattern.permute.xlu0 %v2401_v2  ;;  %v35_v4 = vld [vmem:[%s3683_s3 + $0x8] sm:$0xff]  ;;  %vm152_vm2 = vcmask 130048   ;;  %s2405_s11 = smov 4  }
   0x2   :  { %v34_v3 = vld [vmem:[%s3683_s3] sm:$0xff]  ;;  %2099 = vmatpush.msk.msra.mxu1 %vm107_vm0, %v33_v0  ;;  %49 = vperm.xlu0 %2118, %v35_v4   ;;  %v36_v8 = vld [vmem:[%s3683_s3 + $0x10] sm:$0xff]  ;;  %v28_v9 = vld [vmem:[%s3682_s1 + $0x18] sm:$0xff]  ;;  %s2406_s12 = smov 124   ;;  %s2407_s27 = smov 6  }
   0x3   :  { %44 = vperm.xlu1 %2119, %v34_v3   ;;  %1979 = vmatmul.msk.f32.vlgmr.msra.gmra.mxu1 %vm82_vm1, %v27_v1  ;;  %v25_v5 = vld [vmem:[%s3682_s1] sm:$0xff]  ;;  %v37_v10 = vld [vmem:[%s3683_s3 + $0x18] sm:$0xff]  ;;  %v26_v11 = vld [vmem:[%s3682_s1 + $0x8] sm:$0xff]  ;;  %s2408_s28 = smov 122   ;;  %s2409_s29 = smov 8  }
   0x4   :  { %1976 = vmatpush.msk.msra.mxu0 %vm107_vm0, %v33_v0  ;;  %192 = vmatpush.msrb.mxu1 %v2402_v6  ;;  %v29_v7 = vld [vmem:[%s3682_s1 + $0x20] sm:$0xff]  ;;  %v30_v12 = vld [vmem:[%s3682_s1 + $0x28] sm:$0xff]  ;;  %v31_v14 = vld [vmem:[%s3682_s1 + $0x30] sm:$0xff]  ;;  %s2410_s30 = smov 120   ;;  %s2411_s5 = smov 10  }
   0x5   :  { %1977 = vmatmul.msk.f32.vlgmr.msra.gmra.mxu0 %vm82_vm1, %v25_v5  ;;  %2100 = vmatpush.msk.msra.mxu2 %vm107_vm0, %v33_v0  ;;  %v2488_v13 = vld [vmem:[%s3684_s2] sm:$0xff]  ;;  %v2499_v15 = vld [vmem:[%s3684_s2 + $0x8] sm:$0xff]  ;;  %v32_v17 = vld [vmem:[%s3682_s1 + $0x38] sm:$0xff]  ;;  %s2412_s6 = smov 118   ;;  %s2413_s0 = smov 12  }
   0x6   :  { %1981 = vmatmul.msk.f32.vlgmr.msra.gmra.mxu2 %vm82_vm1, %v29_v7  ;;  %2101 = vmatpush.msk.msra.mxu3 %vm107_vm0, %v33_v0  ;;  %v38_v16 = vld [vmem:[%s3683_s3 + $0x20] sm:$0xff]  ;;  %v39_v18 = vld [vmem:[%s3683_s3 + $0x28] sm:$0xff]  ;;  %v2516_v19 = vld [vmem:[%s3684_s2 + $0x10] sm:$0xff]  ;;  %s2415_s23 = smov 14  }
   0x7   :  { %2120 = vset.pattern.permute.xlu2 %v2401_v2  ;;  %1983 = vmatmul.msk.f32.vlgmr.msra.gmra.mxu3 %vm82_vm1, %v31_v14  ;;  %v2523_v20 = vld [vmem:[%s3684_s2 + $0x18] sm:$0xff]  ;;  %v2533_v22 = vld [vmem:[%s3684_s2 + $0x20] sm:$0xff]  ;;  %v40_v23 = vld [vmem:[%s3683_s3 + $0x30] sm:$0xff] }
   0x8   :  { %v41_v21 = vld [vmem:[%s3683_s3 + $0x38] sm:$0xff]  ;;  %v2543_v24 = vld [vmem:[%s3684_s2 + $0x28] sm:$0xff]  ;;  %v2550_v25 = vld [vmem:[%s3684_s2 + $0x30] sm:$0xff] }
   0x9   :  { %79 = vperm.xlu2 %2120, %v41_v21   ;;  %v2557_v26 = vld [vmem:[%s3684_s2 + $0x38] sm:$0xff] }
   0xa   :  { %59 = vperm.xlu0 %2118, %v37_v10  }
   0xb   :  { %54 = vperm.xlu1 %2119, %v36_v8   ;;  %1980 = vmatmul.msk.f32.gmra.mxu1 %vm82_vm1, %v28_v9 }
   0xd   :  { %1978 = vmatmul.msk.f32.gmra.mxu0 %vm82_vm1, %v26_v11 }
   0xe   :  { %1982 = vmatmul.msk.f32.gmra.mxu2 %vm82_vm1, %v30_v12 }
   0xf   :  { %1984 = vmatmul.msk.f32.gmra.mxu3 %vm82_vm1, %v32_v17 }
  0x11   :  { %74 = vperm.xlu2 %2120, %v40_v23  }
  0x12   :  { %69 = vperm.xlu0 %2118, %v39_v18  }
  0x13   :  { %1985 = vmatmul.msk.f32.vlgmr.msrb.gmra.mxu1 %vm152_vm2, %v2488_v13  ;;  %64 = vperm.xlu1 %2119, %v38_v16  }
  0x1b   :  { %1986 = vmatmul.msk.f32.gmra.mxu1 %vm152_vm2, %v2499_v15 }
  0x23   :  { %1987 = vmatmul.msk.f32.gmra.mxu1 %vm152_vm2, %v2516_v19 }
  0x2b   :  { %1988 = vmatmul.msk.f32.gmra.mxu1 %vm152_vm2, %v2523_v20 }
  0x33   :  { %1989 = vmatmul.msk.f32.gmra.mxu1 %vm152_vm2, %v2533_v22 }
  0x3b   :  { %1990 = vmatmul.msk.f32.gmra.mxu1 %vm152_vm2, %v2543_v24 }
  0x43   :  { %1991 = vmatmul.msk.f32.gmra.mxu1 %vm152_vm2, %v2550_v25 }
  0x4b   :  { %1992 = vmatmul.msk.f32.gmra.mxu1 %vm152_vm2, %v2557_v26 }
  0x63   :  { %v80_v52 = vpop.permute.xlu2 %79 }
  0x6b   :  { %v75_v63 = vpop.permute.xlu2 %74 }
  0x74   :  { %v50_v33 = vpop.permute.xlu0 %49 }
  0x75   :  { %v45_v30 = vpop.permute.xlu1 %44 }
  0x7c   :  { %v60_v38 = vpop.permute.xlu0 %59 }
  0x7d   :  { %v55_v35 = vpop.permute.xlu1 %54 }
  0x80   :  { %v134_v27 = vpop.f32.mrf.mxu1 }
  0x81   :  { %v2561_v37 = vadd.f32 %v134_v27, %v55_v35 }
  0x82   :  { %v128_v31 = vpop.f32.mrf.mxu0 }
  0x83   :  { %v2565_v40 = vadd.f32 %v128_v31, %v45_v30 }
  0x84   :  { %v70_v18 = vpop.permute.xlu0 %69 }
  0x85   :  { %v65_v17 = vpop.permute.xlu1 %64 }
  0x88   :  { %v137_v28 = vpop.f32.mrf.mxu1 }
  0x89   :  { %v2568_v42 = vadd.f32 %v137_v28, %v60_v38  ;;  %v140_v1 = vpop.f32.mrf.mxu2 }
  0x8a   :  { %v131_v36 = vpop.f32.mrf.mxu0  ;;  %v146_v62 = vpop.f32.mrf.mxu3 }
  0x8b   :  { %v2563_v39 = vadd.f32 %v131_v36, %v50_v33  ;;  %v2584_v0 = vadd.f32 %v146_v62, %v75_v63 }
  0x90   :  { %v194_v29 = vpop.f32.mrf.mxu1 }
  0x91   :  { %v218_v45 = vadd.f32 %v194_v29, %v2565_v40  ;;  %v143_v27 = vpop.f32.mrf.mxu2 }
  0x92   :  { %v149_v11 = vpop.f32.mrf.mxu3  ;;  %v2610_v35 = vadd.f32 %v143_v27, %v70_v18 }
  0x93   :  { %v1993_v50 = vmul.f32 -1.442695, %v218_v45  ;;  %v2604_v21 = vadd.f32 %v149_v11, %v80_v52 }
  0x98   :  { %v197_v32 = vpop.f32.mrf.mxu1 }
  0x99   :  { %v219_v43 = vadd.f32 %v197_v32, %v2563_v39 }
  0x9b   :  { %v1994_v49 = vmul.f32 -1.442695, %v219_v43 }
  0xa0   :  { %v200_v34 = vpop.f32.mrf.mxu1 }
  0xa1   :  { %v220_v41 = vadd.f32 %v200_v34, %v2561_v37  ;;  %v2608_v34 = vadd.f32 %v140_v1, %v65_v17 }
  0xa3   :  { %v1995_v47 = vmul.f32 -1.442695, %v220_v41 }
  0xa8   :  { %v203_v44 = vpop.f32.mrf.mxu1 }
  0xa9   :  { %v221_v46 = vadd.f32 %v203_v44, %v2568_v42 }
  0xab   :  { %v1996_v48 = vmul.f32 -1.442695, %v221_v46 }
  0xad   :  { %2121 = vpow2.f32 %v1996_v48 }
  0xae   :  { %2123 = vpow2.f32 %v1995_v47 }
  0xaf   :  { %2125 = vpow2.f32 %v1994_v49 }
  0xb0   :  { %v206_v51 = vpop.f32.mrf.mxu1  ;;  %2127 = vpow2.f32 %v1993_v50 }
  0xb1   :  { %v222_v47 = vadd.f32 %v206_v51, %v2608_v34 }
  0xb3   :  { %v2122_v53 = vpop.eup %2121 }
  0xb4   :  { %v2124_v54 = vpop.eup %2123  ;;  %v2573_v55 = vadd.f32 1.0, %v2122_v53 }
  0xb5   :  { %v2126_v56 = vpop.eup %2125  ;;  %v2575_v58 = vadd.f32 1.0, %v2124_v54 }
  0xb6   :  { %v2128_v57 = vpop.eup %2127  ;;  %v2577_v60 = vadd.f32 1.0, %v2126_v56  ;;  %2129 = vrcp.f32 %v2573_v55  ;;  %v298_v46 = vand.u32 2147483648, %v2573_v55  ;;  %vm292_vm6 = vweird.f32 %v2573_v55 }
  0xb7   :  { %v2580_v61 = vadd.f32 1.0, %v2128_v57  ;;  %2131 = vrcp.f32 %v2575_v58  ;;  %v296_v50 = vand.u32 2147483647, %v2573_v55  ;;  %v283_v52 = vand.u32 2147483648, %v2575_v58 }
  0xb8   :  { %v209_v59 = vpop.f32.mrf.mxu1  ;;  %2133 = vrcp.f32 %v2577_v60  ;;  %vm254_vm8 = vweird.f32 %v2577_v60  ;;  %vm277_vm11 = vweird.f32 %v2575_v58  ;;  %v281_v53 = vand.u32 2147483647, %v2575_v58 }
  0xb9   :  { %2135 = vrcp.f32 %v2580_v61  ;;  %v223_v43 = vadd.f32 %v209_v59, %v2610_v35  ;;  %vm239_vm3 = vweird.f32 %v2580_v61  ;;  %v299_v57 = vor.u32 1.1754944e-38, %v298_v46 }
  0xba   :  { %v258_v62 = vand.u32 2147483647, %v2577_v60  ;;  %v260_v63 = vand.u32 2147483648, %v2577_v60  ;;  %vm297_vm13 = vcmp.eq.f32.partialorder %v296_v50, 8.507059e+37  ;;  %vm282_vm15 = vcmp.eq.f32.partialorder %v281_v53, 8.507059e+37 }
  0xbc   :  { %v2587_v2 = vpop.eup %2129  ;;  %vm259_vm1 = vcmp.eq.f32.partialorder %v258_v62, 8.507059e+37 }
  0xbd   :  { %v2589_v4 = vpop.eup %2131  ;;  %v288_v6 = vmul.f32 %v2587_v2, %v2573_v55  ;;  %vm293_vm4 = vweird.f32 %v2587_v2 }
  0xbe   :  { %v2594_v7 = vpop.eup %2133  ;;  %v273_v10 = vmul.f32 %v2589_v4, %v2575_v58  ;;  %vm278_vm7 = vweird.f32 %v2589_v4  ;;  %vm2632_vm10 = vmor %vm292_vm6, %vm293_vm4 }
  0xbf   :  { %v2596_v9 = vpop.eup %2135  ;;  %v250_v12 = vmul.f32 %v2594_v7, %v2577_v60  ;;  %v289_v14 = vsub.f32 1.0, %v288_v6  ;;  %vm255_vm9 = vweird.f32 %v2594_v7  ;;  %vm2642_vm12 = vmor %vm277_vm11, %vm278_vm7  ;;  %v245_v6 = vand.u32 2147483648, %v2580_v61 }
  0xc0   :  { %v212_v3 = vpop.f32.mrf.mxu1  ;;  %v235_v16 = vmul.f32 %v2596_v9, %v2580_v61  ;;  %v274_v23 = vsub.f32 1.0, %v273_v10  ;;  %vm240_vm5 = vweird.f32 %v2596_v9  ;;  %vm2657_vm14 = vmor %vm254_vm8, %vm255_vm9 }
  0xc1   :  { %v224_v5 = vadd.f32 %v212_v3, %v2584_v0  ;;  %v251_v30 = vsub.f32 1.0, %v250_v12  ;;  %v290_v31 = vmul.f32 %v2587_v2, %v289_v14  ;;  %v243_v12 = vand.u32 2147483647, %v2580_v61  ;;  %vm241_vm0 = vmor %vm239_vm3, %vm240_vm5 }
  0xc2   :  { %v236_v33 = vsub.f32 1.0, %v235_v16  ;;  %v275_v38 = vmul.f32 %v2589_v4, %v274_v23  ;;  %v261_v16 = vor.u32 1.1754944e-38, %v260_v63 }
  0xc3   :  { %v1997_v8 = vmul.f32 -1.442695, %v224_v5  ;;  %v252_v44 = vmul.f32 %v2594_v7, %v251_v30  ;;  %v291_v45 = vadd.f32 %v2587_v2, %v290_v31  ;;  %v284_v5 = vor.u32 1.1754944e-38, %v283_v52 }
  0xc4   :  { %v237_v48 = vmul.f32 %v2596_v9, %v236_v33  ;;  %v276_v49 = vadd.f32 %v2589_v4, %v275_v38  ;;  %vm244_vm4 = vcmp.eq.f32.partialorder %v243_v12, 8.507059e+37 }
  0xc5   :  { %2137 = vpow2.f32 %v1997_v8  ;;  %v253_v54 = vadd.f32 %v2594_v7, %v252_v44  ;;  %v295_v55 = vsel %vm2632_vm10, %v2587_v2, %v291_v45 }
  0xc6   :  { %v238_v58 = vadd.f32 %v2596_v9, %v237_v48  ;;  %v280_v3 = vsel %vm2642_vm12, %v2589_v4, %v276_v49  ;;  %v300_v10 = vsel %vm297_vm13, %v299_v57, %v295_v55 }
  0xc7   :  { %v257_v4 = vsel %vm2657_vm14, %v2594_v7, %v253_v54  ;;  %v285_v60 = vsel %vm282_vm15, %v284_v5, %v280_v3  ;;  %v343_v23 = vmul.f32 0.0, %v300_v10 }
  0xc8   :  { %v215_v28 = vpop.f32.mrf.mxu1  ;;  %v242_v18 = vsel %vm241_vm0, %v2596_v9, %v238_v58  ;;  %v342_v30 = vmul.f32 0.0, %v285_v60 }
  0xc9   :  { %v225_v29 = vadd.f32 %v215_v28, %v2604_v21  ;;  %v246_v28 = vor.u32 1.1754944e-38, %v245_v6 }
  0xcb   :  { %v2138_v32 = vpop.eup %2137  ;;  %v1998_v36 = vmul.f32 -1.442695, %v225_v29  ;;  %v262_v29 = vsel %vm259_vm1, %v261_v16, %v257_v4  ;;  %v247_v31 = vsel %vm244_vm4, %v246_v28, %v242_v18 }
  0xcc   :  { %v2613_v41 = vadd.f32 1.0, %v2138_v32 }
  0xcd   :  { %2139 = vpow2.f32 %v1998_v36 }
  0xce   :  { %2141 = vrcp.f32 %v2613_v41  ;;  %vm317_vm5 = vweird.f32 %v2613_v41  ;;  %v323_v9 = vand.u32 2147483648, %v2613_v41  ;;  %v321_v49 = vand.u32 2147483647, %v2613_v41 }
  0xcf   :  { %2143 = vtanh.f32 %v223_v43 }
  0xd0   :  { %2145 = vtanh.f32 %v222_v47  ;;  %v324_v53 = vor.u32 1.1754944e-38, %v323_v9  ;;  %vm322_vm11 = vcmp.eq.f32.partialorder %v321_v49, 8.507059e+37 }
  0xd3   :  { %v2140_v56 = vpop.eup %2139 }
  0xd4   :  { %v2142_v1 = vpop.eup %2141  ;;  %v311_v2 = vadd.f32 1.0, %v2140_v56 }
  0xd5   :  { %v313_v11 = vmul.f32 %v2142_v1, %v2613_v41  ;;  %v2144_v14 = vpop.eup %2143  ;;  %vm318_vm3 = vweird.f32 %v2142_v1 }
  0xd6   :  { %2147 = vrcp.f32 %v311_v2  ;;  %v2146_v27 = vpop.eup %2145  ;;  %v345_v7 = vmul.f32 %v2144_v14, %v262_v29  ;;  %v338_v46 = vand.u32 2147483648, %v311_v2  ;;  %v336_v48 = vand.u32 2147483647, %v311_v2  ;;  %vm319_vm7 = vmor %vm317_vm5, %vm318_vm3 }
  0xd7   :  { %v314_v17 = vsub.f32 1.0, %v313_v11  ;;  %v344_v36 = vmul.f32 %v2146_v27, %v247_v31  ;;  %vm332_vm8 = vweird.f32 %v311_v2 }
  0xd8   :  { %v347_v38 = vadd.f32 %v345_v7, %v343_v23  ;;  %v339_v51 = vor.u32 1.1754944e-38, %v338_v46  ;;  %vm337_vm10 = vcmp.eq.f32.partialorder %v336_v48, 8.507059e+37 }
  0xd9   :  { %v315_v32 = vmul.f32 %v2142_v1, %v314_v17  ;;  %v346_v43 = vadd.f32 %v344_v36, %v342_v30 }
  0xda   :  { %2149 = vtanh.f32 %v347_v38 }
  0xdb   :  { %v316_v45 = vadd.f32 %v2142_v1, %v315_v32  ;;  %2151 = vtanh.f32 %v346_v43 }
  0xdc   :  { %v2148_v33 = vpop.eup %2147 }
  0xdd   :  { %v328_v61 = vmul.f32 %v2148_v33, %v311_v2  ;;  %vm333_vm6 = vweird.f32 %v2148_v33  ;;  %v320_v52 = vsel %vm319_vm7, %v2142_v1, %v316_v45 }
  0xde   :  { %vm334_vm9 = vmor %vm332_vm8, %vm333_vm6  ;;  %v325_v57 = vsel %vm322_vm11, %v324_v53, %v320_v52 }
  0xdf   :  { %v329_v44 = vsub.f32 1.0, %v328_v61 }
  0xe0   :  { %v2150_v55 = vpop.eup %2149 }
  0xe1   :  { %v330_v47 = vmul.f32 %v2148_v33, %v329_v44  ;;  %v2152_v62 = vpop.eup %2151 }
  0xe2   :  { %v2677_v41 = vmul.f32 %v2152_v62, %v325_v57 }
  0xe3   :  { %v331_v50 = vadd.f32 %v2148_v33, %v330_v47 }
  0xe5   :  { %v335_v54 = vsel %vm334_vm9, %v2148_v33, %v331_v50 }
  0xe6   :  { %v340_v56 = vsel %vm337_vm10, %v339_v51, %v335_v54 }
  0xe7   :  { %v2674_v59 = vmul.f32 %v2150_v55, %v340_v56 }
  0xe9   :  { %368 = vmatpush.msrb.mxu2 %v2674_v59 }
  0xeb   :  { %369 = vmatpush.msrb.mxu2 %v2677_v41 }
  0xec   :  { %1999 = vmatmul.msk.f32.vlgmr.msrb.gmra.mxu2 %vm152_vm2, %v2488_v13 }
  0xf4   :  { %2000 = vmatmul.msk.f32.gmra.mxu2 %vm152_vm2, %v2499_v15 }
  0xfc   :  { %2001 = vmatmul.msk.f32.gmra.mxu2 %vm152_vm2, %v2516_v19 }
 0x104   :  { %2002 = vmatmul.msk.f32.gmra.mxu2 %vm152_vm2, %v2523_v20 }
 0x10c   :  { %2003 = vmatmul.msk.f32.gmra.mxu2 %vm152_vm2, %v2533_v22 }
 0x114   :  { %2004 = vmatmul.msk.f32.gmra.mxu2 %vm152_vm2, %v2543_v24 }
 0x11c   :  { %2005 = vmatmul.msk.f32.gmra.mxu2 %vm152_vm2, %v2550_v25 }
 0x124   :  { %2006 = vmatmul.msk.f32.gmra.mxu2 %vm152_vm2, %v2557_v26 }
 0x16f   :  { %v371_v63 = vpop.f32.mrf.mxu2 }
 0x170   :  { %403 = vrot.lane.b32.xlu1 %v371_v63, %s2403_s9 }
 0x177   :  { %v374_v1 = vpop.f32.mrf.mxu2 }
 0x178   :  { %405 = vrot.lane.b32.xlu2 %v374_v1, %s2403_s9 }
 0x17f   :  { %v377_v58 = vpop.f32.mrf.mxu2 }
 0x180   :  { %407 = vrot.lane.b32.xlu2 %v377_v58, %s2403_s9 }
 0x187   :  { %v380_v3 = vpop.f32.mrf.mxu2 }
 0x188   :  { %409 = vrot.lane.b32.xlu0 %v380_v3, %s2403_s9 }
 0x18f   :  { %v383_v2 = vpop.f32.mrf.mxu2 }
 0x197   :  { %v386_v5 = vpop.f32.mrf.mxu2 }
 0x198   :  { %413 = vrot.lane.b32.xlu2 %v386_v5, %s2403_s9 }
 0x19f   :  { %v389_v6 = vpop.f32.mrf.mxu2 }
 0x1a0   :  { %553 = vrot.lane.b32.xlu2 %v346_v43, %s2403_s9  ;;  %415 = vrot.lane.b32.xlu1 %v389_v6, %s2403_s9 }
 0x1a7   :  { %v392_v8 = vpop.f32.mrf.mxu2 }
 0x1a8   :  { %555 = vrot.lane.b32.xlu1 %v347_v38, %s2403_s9  ;;  %417 = vrot.lane.b32.xlu0 %v392_v8, %s2403_s9 }
 0x1b0   :  { %411 = vrot.lane.b32.xlu0 %v383_v2, %s2403_s9 }
 0x1d2   :  { %v406_v10 = vpop.permute.xlu2 %405 }
 0x1d3   :  { %v428_v17 = vadd.f32 %v406_v10, %v2563_v39 }
 0x1d5   :  { %v2008_v28 = vmul.f32 -1.442695, %v428_v17 }
 0x1da   :  { %v408_v11 = vpop.permute.xlu2 %407 }
 0x1db   :  { %v429_v4 = vadd.f32 %v408_v11, %v2561_v37 }
 0x1dd   :  { %v2009_v18 = vmul.f32 -1.442695, %v429_v4 }
 0x1df   :  { %2153 = vpow2.f32 %v2009_v18 }
 0x1e2   :  { %v404_v12 = vpop.permute.xlu1 %403 }
 0x1e3   :  { %v427_v14 = vadd.f32 %v404_v12, %v2565_v40 }
 0x1e5   :  { %v2007_v23 = vmul.f32 -1.442695, %v427_v14  ;;  %v2154_v29 = vpop.eup %2153 }
 0x1e6   :  { %v2710_v31 = vadd.f32 1.0, %v2154_v29 }
 0x1e7   :  { %2155 = vpow2.f32 %v2007_v23 }
 0x1e8   :  { %vm486_vm14 = vweird.f32 %v2710_v31  ;;  %v490_v10 = vand.u32 2147483647, %v2710_v31  ;;  %v492_v4 = vand.u32 2147483648, %v2710_v31 }
 0x1ea   :  { %vm2778_vm7 = vcmp.eq.f32.partialorder %v490_v10, 8.507059e+37 }
 0x1ed   :  { %v2156_v30 = vpop.eup %2155 }
 0x1ee   :  { %v2712_v33 = vadd.f32 1.0, %v2156_v30 }
 0x1f0   :  { %vm448_vm3 = vweird.f32 %v2712_v33 }
 0x1f2   :  { %v414_v55 = vpop.permute.xlu2 %413 }
 0x1f3   :  { %v432_v3 = vadd.f32 %v414_v55, %v2610_v35 }
 0x1fa   :  { %v410_v60 = vpop.permute.xlu0 %409 }
 0x1fb   :  { %v430_v16 = vadd.f32 %v410_v60, %v2568_v42 }
 0x1fd   :  { %v2010_v27 = vmul.f32 -1.442695, %v430_v16 }
 0x1ff   :  { %2157 = vpow2.f32 %v2010_v27  ;;  %v454_v27 = vand.u32 2147483648, %v2712_v33 }
 0x200   :  { %2159 = vpow2.f32 %v2008_v28 }
 0x201   :  { %2161 = vrcp.f32 %v2710_v31 }
 0x202   :  { %2163 = vrcp.f32 %v2712_v33 }
 0x205   :  { %v2158_v7 = vpop.eup %2157 }
 0x206   :  { %v2160_v32 = vpop.eup %2159  ;;  %v2714_v36 = vadd.f32 1.0, %v2158_v7 }
 0x207   :  { %v2716_v38 = vadd.f32 1.0, %v2160_v32  ;;  %v2722_v43 = vpop.eup %2161 }
 0x208   :  { %2165 = vrcp.f32 %v2714_v36  ;;  %v2725_v45 = vpop.eup %2163  ;;  %v482_v49 = vmul.f32 %v2722_v43, %v2710_v31  ;;  %vm487_vm15 = vweird.f32 %v2722_v43  ;;  %v507_v23 = vand.u32 2147483648, %v2714_v36 }
 0x209   :  { %2167 = vrcp.f32 %v2716_v38  ;;  %v444_v48 = vmul.f32 %v2725_v45, %v2712_v33  ;;  %vm463_vm12 = vweird.f32 %v2716_v38  ;;  %v469_v8 = vand.u32 2147483648, %v2716_v38  ;;  %vm2761_vm4 = vmor %vm486_vm14, %vm487_vm15 }
 0x20a   :  { %v483_v56 = vsub.f32 1.0, %v482_v49  ;;  %vm449_vm0 = vweird.f32 %v2725_v45  ;;  %vm501_vm5 = vweird.f32 %v2714_v36  ;;  %v505_v30 = vand.u32 2147483647, %v2714_v36 }
 0x20b   :  { %v445_v54 = vsub.f32 1.0, %v444_v48  ;;  %vm2773_vm6 = vmor %vm448_vm3, %vm449_vm0  ;;  %v452_v31 = vand.u32 2147483647, %v2712_v33  ;;  %v470_v48 = vor.u32 1.1754944e-38, %v469_v8 }
 0x20c   :  { %v484_v2 = vmul.f32 %v2722_v43, %v483_v56  ;;  %vm506_vm10 = vcmp.eq.f32.partialorder %v505_v30, 8.507059e+37 }
 0x20d   :  { %v446_v6 = vmul.f32 %v2725_v45, %v445_v54  ;;  %v554_v54 = vpop.permute.xlu2 %553  ;;  %vm453_vm11 = vcmp.eq.f32.partialorder %v452_v31, 8.507059e+37 }
 0x20e   :  { %v2727_v46 = vpop.eup %2165  ;;  %v485_v60 = vadd.f32 %v2722_v43, %v484_v2 }
 0x20f   :  { %v2729_v47 = vpop.eup %2167  ;;  %v497_v50 = vmul.f32 %v2727_v46, %v2714_v36  ;;  %vm502_vm1 = vweird.f32 %v2727_v46  ;;  %v447_v17 = vadd.f32 %v2725_v45, %v446_v6 }
 0x210   :  { %v459_v52 = vmul.f32 %v2729_v47, %v2716_v38  ;;  %vm464_vm13 = vweird.f32 %v2729_v47  ;;  %vm2786_vm8 = vmor %vm501_vm5, %vm502_vm1  ;;  %v489_v33 = vsel %vm2761_vm4, %v2722_v43, %v485_v60  ;;  %v508_v43 = vor.u32 1.1754944e-38, %v507_v23 }
 0x211   :  { %v498_v57 = vsub.f32 1.0, %v497_v50  ;;  %vm2803_vm9 = vmor %vm463_vm12, %vm464_vm13 }
 0x212   :  { %v416_v61 = vpop.permute.xlu1 %415  ;;  %v460_v58 = vsub.f32 1.0, %v459_v52  ;;  %v451_v52 = vsel %vm2773_vm6, %v2725_v45, %v447_v17 }
 0x213   :  { %v433_v44 = vadd.f32 %v416_v61, %v2584_v0  ;;  %v499_v5 = vmul.f32 %v2727_v46, %v498_v57  ;;  %v455_v57 = vor.u32 1.1754944e-38, %v454_v27 }
 0x214   :  { %v461_v11 = vmul.f32 %v2729_v47, %v460_v58 }
 0x215   :  { %v2011_v9 = vmul.f32 -1.442695, %v433_v44  ;;  %v500_v16 = vadd.f32 %v2727_v46, %v499_v5  ;;  %v456_v58 = vsel %vm453_vm11, %v455_v57, %v451_v52 }
 0x216   :  { %v462_v29 = vadd.f32 %v2729_v47, %v461_v11 }
 0x217   :  { %2169 = vpow2.f32 %v2011_v9  ;;  %v467_v9 = vand.u32 2147483647, %v2716_v38  ;;  %v504_v49 = vsel %vm2786_vm8, %v2727_v46, %v500_v16 }
 0x218   :  { %v509_v38 = vsel %vm506_vm10, %v508_v43, %v504_v49 }
 0x219   :  { %vm468_vm12 = vcmp.eq.f32.partialorder %v467_v9, 8.507059e+37 }
 0x21a   :  { %v418_v51 = vpop.permute.xlu0 %417  ;;  %v556_v56 = vpop.permute.xlu1 %555 }
 0x21b   :  { %v434_v53 = vadd.f32 %v418_v51, %v2604_v21  ;;  %v560_v5 = vmul.f32 %v556_v56, %v509_v38 }
 0x21d   :  { %v2170_v62 = vpop.eup %2169  ;;  %v2012_v63 = vmul.f32 -1.442695, %v434_v53  ;;  %v493_v53 = vor.u32 1.1754944e-38, %v492_v4 }
 0x21e   :  { %v2740_v1 = vadd.f32 1.0, %v2170_v62  ;;  %v466_v62 = vsel %vm2803_vm9, %v2729_v47, %v462_v29 }
 0x21f   :  { %v471_v8 = vsel %vm468_vm12, %v470_v48, %v466_v62 }
 0x220   :  { %2171 = vrcp.f32 %v2740_v1  ;;  %vm526_vm14 = vweird.f32 %v2740_v1  ;;  %v530_v16 = vand.u32 2147483647, %v2740_v1 }
 0x221   :  { %2173 = vpow2.f32 %v2012_v63  ;;  %v494_v63 = vsel %vm2778_vm7, %v493_v53, %v489_v33 }
 0x222   :  { %v412_v12 = vpop.permute.xlu0 %411  ;;  %2175 = vtanh.f32 %v432_v3  ;;  %v559_v2 = vmul.f32 %v554_v54, %v494_v63  ;;  %vm531_vm0 = vcmp.eq.f32.partialorder %v530_v16, 8.507059e+37 }
 0x223   :  { %v431_v14 = vadd.f32 %v412_v12, %v2608_v34 }
 0x225   :  { %2177 = vtanh.f32 %v431_v14  ;;  %v532_v14 = vand.u32 2147483648, %v2740_v1 }
 0x226   :  { %v2172_v28 = vpop.eup %2171 }
 0x227   :  { %v2174_v32 = vpop.eup %2173  ;;  %v522_v44 = vmul.f32 %v2172_v28, %v2740_v1  ;;  %vm527_vm13 = vweird.f32 %v2172_v28  ;;  %v533_v23 = vor.u32 1.1754944e-38, %v532_v14 }
 0x228   :  { %v520_v50 = vadd.f32 1.0, %v2174_v32  ;;  %v2176_v51 = vpop.eup %2175  ;;  %vm528_vm15 = vmor %vm526_vm14, %vm527_vm13 }
 0x229   :  { %v523_v46 = vsub.f32 1.0, %v522_v44  ;;  %v562_v10 = vmul.f32 %v2176_v51, %v471_v8 }
 0x22a   :  { %2179 = vrcp.f32 %v520_v50  ;;  %v547_v27 = vand.u32 2147483648, %v520_v50  ;;  %v545_v30 = vand.u32 2147483647, %v520_v50  ;;  %vm541_vm4 = vweird.f32 %v520_v50 }
 0x22b   :  { %v2178_v45 = vpop.eup %2177  ;;  %v524_v3 = vmul.f32 %v2172_v28, %v523_v46  ;;  %v564_v4 = vadd.f32 %v562_v10, %v560_v5 }
 0x22c   :  { %v561_v6 = vmul.f32 %v2178_v45, %v456_v58  ;;  %v548_v44 = vor.u32 1.1754944e-38, %v547_v27  ;;  %vm546_vm5 = vcmp.eq.f32.partialorder %v545_v30, 8.507059e+37 }
 0x22d   :  { %v525_v12 = vadd.f32 %v2172_v28, %v524_v3 }
 0x22e   :  { %v563_v11 = vadd.f32 %v561_v6, %v559_v2 }
 0x22f   :  { %v529_v17 = vsel %vm528_vm15, %v2172_v28, %v525_v12 }
 0x230   :  { %v2180_v47 = vpop.eup %2179  ;;  %2181 = vtanh.f32 %v563_v11  ;;  %v534_v31 = vsel %vm531_vm0, %v533_v23, %v529_v17 }
 0x231   :  { %v537_v60 = vmul.f32 %v2180_v47, %v520_v50  ;;  %2183 = vtanh.f32 %v564_v4  ;;  %vm542_vm1 = vweird.f32 %v2180_v47 }
 0x232   :  { %vm543_vm3 = vmor %vm541_vm4, %vm542_vm1 }
 0x233   :  { %v538_v18 = vsub.f32 1.0, %v537_v60 }
 0x235   :  { %v539_v29 = vmul.f32 %v2180_v47, %v538_v18 }
 0x236   :  { %v2182_v7 = vpop.eup %2181 }
 0x237   :  { %v567_v32 = vmul.f32 %v2182_v7, %v534_v31  ;;  %v540_v61 = vadd.f32 %v2180_v47, %v539_v29  ;;  %v2184_v28 = vpop.eup %2183 }
 0x239   :  { %571 = vrot.lane.b32.xlu1 %v567_v32, %s2404_s10  ;;  %v544_v1 = vsel %vm543_vm3, %v2180_v47, %v540_v61 }
 0x23a   :  { %v549_v9 = vsel %vm546_vm5, %v548_v44, %v544_v1 }
 0x23b   :  { %v568_v48 = vmul.f32 %v2184_v28, %v549_v9 }
 0x23d   :  { %573 = vrot.lane.b32.xlu0 %v568_v48, %s2404_s10 }
 0x2ab   :  { %v2818_v33 = vpop.permute.xlu1 %571 }
 0x2af   :  { %v2815_v36 = vpop.permute.xlu0 %573 }
 0x2b0   :  { %593 = vmatpush.msrb.mxu3 %v2815_v36 }
 0x2b2   :  { %594 = vmatpush.msrb.mxu3 %v2818_v33 }
 0x2b3   :  { %2013 = vmatmul.msk.f32.vlgmr.msrb.gmra.mxu3 %vm152_vm2, %v2488_v13 }
 0x2bb   :  { %2014 = vmatmul.msk.f32.gmra.mxu3 %vm152_vm2, %v2499_v15 }
 0x2c3   :  { %2015 = vmatmul.msk.f32.gmra.mxu3 %vm152_vm2, %v2516_v19 }
 0x2cb   :  { %2016 = vmatmul.msk.f32.gmra.mxu3 %vm152_vm2, %v2523_v20 }
 0x2d3   :  { %2017 = vmatmul.msk.f32.gmra.mxu3 %vm152_vm2, %v2533_v22 }
 0x2db   :  { %2018 = vmatmul.msk.f32.gmra.mxu3 %vm152_vm2, %v2543_v24 }
 0x2e3   :  { %2019 = vmatmul.msk.f32.gmra.mxu3 %vm152_vm2, %v2550_v25 }
 0x2eb   :  { %2020 = vmatmul.msk.f32.gmra.mxu3 %vm152_vm2, %v2557_v26 }
 0x336   :  { %v596_v13 = vpop.f32.mrf.mxu3 }
 0x337   :  { %628 = vrot.lane.b32.xlu1 %v596_v13, %s2405_s11 }
 0x33e   :  { %v599_v15 = vpop.f32.mrf.mxu3 }
 0x33f   :  { %630 = vrot.lane.b32.xlu2 %v599_v15, %s2405_s11 }
 0x346   :  { %v602_v19 = vpop.f32.mrf.mxu3 }
 0x347   :  { %632 = vrot.lane.b32.xlu2 %v602_v19, %s2405_s11 }
 0x34e   :  { %v605_v20 = vpop.f32.mrf.mxu3 }
 0x34f   :  { %634 = vrot.lane.b32.xlu0 %v605_v20, %s2405_s11 }
 0x356   :  { %v608_v49 = vpop.f32.mrf.mxu3 }
 0x35e   :  { %v611_v22 = vpop.f32.mrf.mxu3 }
 0x35f   :  { %638 = vrot.lane.b32.xlu2 %v611_v22, %s2405_s11 }
 0x366   :  { %v614_v50 = vpop.f32.mrf.mxu3 }
 0x367   :  { %778 = vrot.lane.b32.xlu2 %v563_v11, %s2403_s9  ;;  %640 = vrot.lane.b32.xlu1 %v614_v50, %s2405_s11 }
 0x36e   :  { %v617_v24 = vpop.f32.mrf.mxu3 }
 0x36f   :  { %780 = vrot.lane.b32.xlu1 %v564_v4, %s2403_s9  ;;  %642 = vrot.lane.b32.xlu0 %v617_v24, %s2405_s11 }
 0x377   :  { %636 = vrot.lane.b32.xlu0 %v608_v49, %s2405_s11 }
 0x399   :  { %v631_v25 = vpop.permute.xlu2 %630 }
 0x39a   :  { %v653_v43 = vadd.f32 %v631_v25, %v2563_v39 }
 0x39c   :  { %v2022_v62 = vmul.f32 -1.442695, %v653_v43 }
 0x3a1   :  { %v633_v26 = vpop.permute.xlu2 %632 }
 0x3a2   :  { %v654_v51 = vadd.f32 %v633_v26, %v2561_v37 }
 0x3a4   :  { %v2023_v56 = vmul.f32 -1.442695, %v654_v51 }
 0x3a6   :  { %2185 = vpow2.f32 %v2023_v56 }
 0x3a9   :  { %v629_v52 = vpop.permute.xlu1 %628 }
 0x3aa   :  { %v652_v53 = vadd.f32 %v629_v52, %v2565_v40 }
 0x3ac   :  { %v2021_v57 = vmul.f32 -1.442695, %v652_v53  ;;  %v2186_v45 = vpop.eup %2185 }
 0x3ad   :  { %v2843_v58 = vadd.f32 1.0, %v2186_v45 }
 0x3ae   :  { %2187 = vpow2.f32 %v2021_v57 }
 0x3af   :  { %vm711_vm8 = vweird.f32 %v2843_v58  ;;  %v715_v19 = vand.u32 2147483647, %v2843_v58  ;;  %v717_v22 = vand.u32 2147483648, %v2843_v58 }
 0x3b1   :  { %vm2911_vm0 = vcmp.eq.f32.partialorder %v715_v19, 8.507059e+37 }
 0x3b4   :  { %v2188_v63 = vpop.eup %2187 }
 0x3b5   :  { %v2845_v2 = vadd.f32 1.0, %v2188_v63 }
 0x3b7   :  { %vm673_vm13 = vweird.f32 %v2845_v2  ;;  %v679_v53 = vand.u32 2147483648, %v2845_v2  ;;  %v677_v57 = vand.u32 2147483647, %v2845_v2 }
 0x3b9   :  { %v639_v30 = vpop.permute.xlu2 %638  ;;  %vm678_vm5 = vcmp.eq.f32.partialorder %v677_v57, 8.507059e+37 }
 0x3ba   :  { %v657_v28 = vadd.f32 %v639_v30, %v2610_v35 }
 0x3c1   :  { %v635_v54 = vpop.permute.xlu0 %634 }
 0x3c2   :  { %v655_v55 = vadd.f32 %v635_v54, %v2568_v42 }
 0x3c4   :  { %v2024_v46 = vmul.f32 -1.442695, %v655_v55 }
 0x3c6   :  { %2189 = vpow2.f32 %v2024_v46 }
 0x3c7   :  { %2191 = vpow2.f32 %v2022_v62  ;;  %v2963_v62 = vld [vmem:[%s3684_s2] sm:$0xff] }
 0x3c8   :  { %2193 = vrcp.f32 %v2843_v58 }
 0x3c9   :  { %2195 = vrcp.f32 %v2845_v2 }
 0x3cc   :  { %v2190_v38 = vpop.eup %2189 }
 0x3cd   :  { %v2192_v3 = vpop.eup %2191  ;;  %v2847_v5 = vadd.f32 1.0, %v2190_v38 }
 0x3ce   :  { %v2849_v6 = vadd.f32 1.0, %v2192_v3  ;;  %v2855_v10 = vpop.eup %2193 }
 0x3cf   :  { %2197 = vrcp.f32 %v2847_v5  ;;  %v2858_v12 = vpop.eup %2195  ;;  %v707_v16 = vmul.f32 %v2855_v10, %v2843_v58  ;;  %vm712_vm9 = vweird.f32 %v2855_v10  ;;  %v732_v51 = vand.u32 2147483648, %v2847_v5  ;;  %v2991_v58 = vld [vmem:[%s3684_s2 + $0x20] sm:$0xff] }
 0x3d0   :  { %2199 = vrcp.f32 %v2849_v6  ;;  %v669_v60 = vmul.f32 %v2858_v12, %v2845_v2  ;;  %vm688_vm6 = vweird.f32 %v2849_v6  ;;  %v694_v15 = vand.u32 2147483648, %v2849_v6  ;;  %vm2894_vm12 = vmor %vm711_vm8, %vm712_vm9 }
 0x3d1   :  { %v708_v7 = vsub.f32 1.0, %v707_v16  ;;  %vm674_vm10 = vweird.f32 %v2858_v12  ;;  %vm726_vm14 = vweird.f32 %v2847_v5  ;;  %v730_v43 = vand.u32 2147483647, %v2847_v5 }
 0x3d2   :  { %v670_v29 = vsub.f32 1.0, %v669_v60  ;;  %vm2906_vm15 = vmor %vm673_vm13, %vm674_vm10  ;;  %v692_v63 = vand.u32 2147483647, %v2849_v6  ;;  %v695_v38 = vor.u32 1.1754944e-38, %v694_v15  ;;  %v779_v60 = vpop.permute.xlu2 %778 }
 0x3d3   :  { %v709_v9 = vmul.f32 %v2855_v10, %v708_v7  ;;  %vm731_vm3 = vcmp.eq.f32.partialorder %v730_v43, 8.507059e+37 }
 0x3d4   :  { %v671_v13 = vmul.f32 %v2858_v12, %v670_v29 }
 0x3d5   :  { %v2860_v47 = vpop.eup %2197  ;;  %v710_v24 = vadd.f32 %v2855_v10, %v709_v9 }
 0x3d6   :  { %v2862_v14 = vpop.eup %2199  ;;  %v722_v17 = vmul.f32 %v2860_v47, %v2847_v5  ;;  %vm727_vm11 = vweird.f32 %v2860_v47  ;;  %v672_v26 = vadd.f32 %v2858_v12, %v671_v13 }
 0x3d7   :  { %v684_v18 = vmul.f32 %v2862_v14, %v2849_v6  ;;  %vm689_vm7 = vweird.f32 %v2862_v14  ;;  %vm2919_vm1 = vmor %vm726_vm14, %vm727_vm11  ;;  %v714_v3 = vsel %vm2894_vm12, %v2855_v10, %v710_v24  ;;  %v733_v10 = vor.u32 1.1754944e-38, %v732_v51 }
 0x3d8   :  { %v723_v31 = vsub.f32 1.0, %v722_v17  ;;  %vm2936_vm4 = vmor %vm688_vm6, %vm689_vm7  ;;  %vm693_vm6 = vcmp.eq.f32.partialorder %v692_v63, 8.507059e+37  ;;  %v2977_v63 = vld [vmem:[%s3684_s2 + $0x10] sm:$0xff] }
 0x3d9   :  { %v641_v8 = vpop.permute.xlu1 %640  ;;  %v685_v1 = vsub.f32 1.0, %v684_v18  ;;  %v680_v18 = vor.u32 1.1754944e-38, %v679_v53 }
 0x3da   :  { %v658_v11 = vadd.f32 %v641_v8, %v2584_v0  ;;  %v724_v48 = vmul.f32 %v2860_v47, %v723_v31  ;;  %v676_v8 = vsel %vm2906_vm15, %v2858_v12, %v672_v26 }
 0x3db   :  { %v686_v20 = vmul.f32 %v2862_v14, %v685_v1  ;;  %v681_v29 = vsel %vm678_vm5, %v680_v18, %v676_v8 }
 0x3dc   :  { %v2025_v4 = vmul.f32 -1.442695, %v658_v11  ;;  %v725_v25 = vadd.f32 %v2860_v47, %v724_v48 }
 0x3dd   :  { %v687_v55 = vadd.f32 %v2862_v14, %v686_v20 }
 0x3de   :  { %2201 = vpow2.f32 %v2025_v4  ;;  %v729_v2 = vsel %vm2919_vm1, %v2860_v47, %v725_v25  ;;  %v718_v4 = vor.u32 1.1754944e-38, %v717_v22 }
 0x3df   :  { %v734_v6 = vsel %vm731_vm3, %v733_v10, %v729_v2  ;;  %v3005_v2 = vld [vmem:[%s3684_s2 + $0x30] sm:$0xff] }
 0x3e1   :  { %v643_v23 = vpop.permute.xlu0 %642  ;;  %v781_v17 = vpop.permute.xlu1 %780 }
 0x3e2   :  { %v659_v27 = vadd.f32 %v643_v23, %v2604_v21  ;;  %v691_v23 = vsel %vm2936_vm4, %v2862_v14, %v687_v55  ;;  %v785_v31 = vmul.f32 %v781_v17, %v734_v6 }
 0x3e4   :  { %v2202_v32 = vpop.eup %2201  ;;  %v2026_v61 = vmul.f32 -1.442695, %v659_v27  ;;  %v719_v27 = vsel %vm2911_vm0, %v718_v4, %v714_v3  ;;  %v2998_v3 = vld [vmem:[%s3684_s2 + $0x28] sm:$0xff] }
 0x3e5   :  { %v2873_v44 = vadd.f32 1.0, %v2202_v32  ;;  %v784_v7 = vmul.f32 %v779_v60, %v719_v27 }
 0x3e7   :  { %2203 = vrcp.f32 %v2873_v44  ;;  %v757_v13 = vand.u32 2147483648, %v2873_v44  ;;  %vm751_vm8 = vweird.f32 %v2873_v44  ;;  %v755_v19 = vand.u32 2147483647, %v2873_v44 }
 0x3e8   :  { %2205 = vpow2.f32 %v2026_v61  ;;  %v696_v61 = vsel %vm693_vm6, %v695_v38, %v691_v23  ;;  %v2984_v38 = vld [vmem:[%s3684_s2 + $0x18] sm:$0xff] }
 0x3e9   :  { %v637_v49 = vpop.permute.xlu0 %636  ;;  %2207 = vtanh.f32 %v657_v28  ;;  %v758_v22 = vor.u32 1.1754944e-38, %v757_v13  ;;  %vm756_vm10 = vcmp.eq.f32.partialorder %v755_v19, 8.507059e+37 }
 0x3ea   :  { %v656_v50 = vadd.f32 %v637_v49, %v2608_v34 }
 0x3ec   :  { %2209 = vtanh.f32 %v656_v50 }
 0x3ed   :  { %v2204_v54 = vpop.eup %2203 }
 0x3ee   :  { %v2206_v46 = vpop.eup %2205  ;;  %v747_v45 = vmul.f32 %v2204_v54, %v2873_v44  ;;  %vm752_vm7 = vweird.f32 %v2204_v54 }
 0x3ef   :  { %v745_v5 = vadd.f32 1.0, %v2206_v46  ;;  %v2208_v11 = vpop.eup %2207  ;;  %vm753_vm9 = vmor %vm751_vm8, %vm752_vm7 }
 0x3f0   :  { %v748_v47 = vsub.f32 1.0, %v747_v45  ;;  %v787_v1 = vmul.f32 %v2208_v11, %v696_v61  ;;  %v2970_v45 = vld [vmem:[%s3684_s2 + $0x8] sm:$0xff] }
 0x3f1   :  { %2211 = vrcp.f32 %v745_v5  ;;  %v772_v50 = vand.u32 2147483648, %v745_v5  ;;  %v770_v25 = vand.u32 2147483647, %v745_v5  ;;  %vm766_vm12 = vweird.f32 %v745_v5 }
 0x3f2   :  { %v2210_v12 = vpop.eup %2209  ;;  %v749_v30 = vmul.f32 %v2204_v54, %v748_v47  ;;  %v2947_v48 = vadd.f32 %v787_v1, %v785_v31 }
 0x3f3   :  { %v786_v32 = vmul.f32 %v2210_v12, %v681_v29  ;;  %v773_v55 = vor.u32 1.1754944e-38, %v772_v50  ;;  %vm771_vm14 = vcmp.eq.f32.partialorder %v770_v25, 8.507059e+37 }
 0x3f4   :  { %v750_v9 = vadd.f32 %v2204_v54, %v749_v30 }
 0x3f5   :  { %v2945_v28 = vadd.f32 %v786_v32, %v784_v7 }
 0x3f6   :  { %v754_v20 = vsel %vm753_vm9, %v2204_v54, %v750_v9 }
 0x3f7   :  { %v2212_v14 = vpop.eup %2211  ;;  %2213 = vtanh.f32 %v2945_v28  ;;  %v759_v52 = vsel %vm756_vm10, %v758_v22, %v754_v20 }
 0x3f8   :  { %v762_v15 = vmul.f32 %v2212_v14, %v745_v5  ;;  %2215 = vtanh.f32 %v2947_v48  ;;  %vm767_vm11 = vweird.f32 %v2212_v14  ;;  %v3012_v5 = vld [vmem:[%s3684_s2 + $0x38] sm:$0xff] }
 0x3f9   :  { %vm768_vm13 = vmor %vm766_vm12, %vm767_vm11 }
 0x3fa   :  { %v763_v49 = vsub.f32 1.0, %v762_v15 }
 0x3fc   :  { %v764_v24 = vmul.f32 %v2212_v14, %v763_v49 }
 0x3fd   :  { %v2214_v26 = vpop.eup %2213 }
 0x3fe   :  { %v792_v51 = vmul.f32 %v2214_v26, %v759_v52  ;;  %v765_v53 = vadd.f32 %v2212_v14, %v764_v24  ;;  %v2216_v54 = vpop.eup %2215 }
 0x400   :  { %796 = vrot.lane.b32.xlu1 %v792_v51, %s2406_s12  ;;  %v769_v44 = vsel %vm768_vm13, %v2212_v14, %v765_v53 }
 0x401   :  { %v774_v43 = vsel %vm771_vm14, %v773_v55, %v769_v44 }
 0x402   :  { %v793_v56 = vmul.f32 %v2216_v54, %v774_v43 }
 0x404   :  { %798 = vrot.lane.b32.xlu0 %v793_v56, %s2406_s12 }
 0x472   :  { %v2957_v46 = vpop.permute.xlu1 %796 }
 0x476   :  { %v2954_v57 = vpop.permute.xlu0 %798 }
 0x477   :  { %818 = vmatpush.msrb.mxu0 %v2954_v57 }
 0x479   :  { %819 = vmatpush.msrb.mxu0 %v2957_v46 }
 0x47a   :  { %2027 = vmatmul.msk.f32.vlgmr.msrb.gmra.mxu0 %vm152_vm2, %v2963_v62 }
 0x482   :  { %2028 = vmatmul.msk.f32.gmra.mxu0 %vm152_vm2, %v2970_v45 }
 0x48a   :  { %2029 = vmatmul.msk.f32.gmra.mxu0 %vm152_vm2, %v2977_v63 }
 0x492   :  { %2030 = vmatmul.msk.f32.gmra.mxu0 %vm152_vm2, %v2984_v38 }
 0x49a   :  { %2031 = vmatmul.msk.f32.gmra.mxu0 %vm152_vm2, %v2991_v58 }
 0x4a2   :  { %2032 = vmatmul.msk.f32.gmra.mxu0 %vm152_vm2, %v2998_v3 }
 0x4aa   :  { %2033 = vmatmul.msk.f32.gmra.mxu0 %vm152_vm2, %v3005_v2 }
 0x4b2   :  { %2034 = vmatmul.msk.f32.gmra.mxu0 %vm152_vm2, %v3012_v5 }
 0x4f7   :  { %v821_v8 = vpop.f32.mrf.mxu0 }
 0x4f8   :  { %853 = vrot.lane.b32.xlu1 %v821_v8, %s2407_s27 }
 0x4ff   :  { %v824_v11 = vpop.f32.mrf.mxu0 }
 0x500   :  { %855 = vrot.lane.b32.xlu2 %v824_v11, %s2407_s27 }
 0x507   :  { %v827_v4 = vpop.f32.mrf.mxu0 }
 0x508   :  { %857 = vrot.lane.b32.xlu2 %v827_v4, %s2407_s27 }
 0x50f   :  { %v830_v60 = vpop.f32.mrf.mxu0 }
 0x510   :  { %859 = vrot.lane.b32.xlu0 %v830_v60, %s2407_s27 }
 0x517   :  { %v833_v16 = vpop.f32.mrf.mxu0 }
 0x51f   :  { %v836_v10 = vpop.f32.mrf.mxu0 }
 0x520   :  { %863 = vrot.lane.b32.xlu2 %v836_v10, %s2407_s27 }
 0x527   :  { %v839_v17 = vpop.f32.mrf.mxu0 }
 0x528   :  { %1003 = vrot.lane.b32.xlu2 %v2945_v28, %s2403_s9  ;;  %865 = vrot.lane.b32.xlu1 %v839_v17, %s2407_s27 }
 0x52f   :  { %v842_v18 = vpop.f32.mrf.mxu0 }
 0x530   :  { %1005 = vrot.lane.b32.xlu1 %v2947_v48, %s2403_s9  ;;  %867 = vrot.lane.b32.xlu0 %v842_v18, %s2407_s27 }
 0x538   :  { %861 = vrot.lane.b32.xlu0 %v833_v16, %s2407_s27 }
 0x55a   :  { %v856_v47 = vpop.permute.xlu2 %855 }
 0x55b   :  { %v878_v7 = vadd.f32 %v856_v47, %v2563_v39 }
 0x55d   :  { %v2036_v1 = vmul.f32 -1.442695, %v878_v7 }
 0x562   :  { %v858_v23 = vpop.permute.xlu2 %857 }
 0x563   :  { %v879_v27 = vadd.f32 %v858_v23, %v2561_v37 }
 0x565   :  { %v2037_v31 = vmul.f32 -1.442695, %v879_v27 }
 0x567   :  { %2217 = vpow2.f32 %v2037_v31 }
 0x56a   :  { %v854_v12 = vpop.permute.xlu1 %853 }
 0x56b   :  { %v877_v6 = vadd.f32 %v854_v12, %v2565_v40 }
 0x56d   :  { %v2035_v32 = vmul.f32 -1.442695, %v877_v6  ;;  %v2218_v28 = vpop.eup %2217 }
 0x56e   :  { %v3024_v48 = vadd.f32 1.0, %v2218_v28 }
 0x56f   :  { %2219 = vpow2.f32 %v2035_v32 }
 0x570   :  { %vm936_vm1 = vweird.f32 %v3024_v48  ;;  %v940_v6 = vand.u32 2147483647, %v3024_v48  ;;  %v942_v7 = vand.u32 2147483648, %v3024_v48 }
 0x572   :  { %vm3092_vm10 = vcmp.eq.f32.partialorder %v940_v6, 8.507059e+37 }
 0x575   :  { %v2220_v9 = vpop.eup %2219 }
 0x576   :  { %v3026_v15 = vadd.f32 1.0, %v2220_v9 }
 0x578   :  { %vm898_vm7 = vweird.f32 %v3026_v15 }
 0x57a   :  { %v864_v8 = vpop.permute.xlu2 %863 }
 0x57b   :  { %v882_v18 = vadd.f32 %v864_v8, %v2610_v35 }
 0x582   :  { %v860_v29 = vpop.permute.xlu0 %859 }
 0x583   :  { %v880_v30 = vadd.f32 %v860_v29, %v2568_v42 }
 0x585   :  { %v2038_v61 = vmul.f32 -1.442695, %v880_v30 }
 0x587   :  { %2221 = vpow2.f32 %v2038_v61 }
 0x588   :  { %2223 = vpow2.f32 %v2036_v1 }
 0x589   :  { %2225 = vrcp.f32 %v3024_v48 }
 0x58a   :  { %2227 = vrcp.f32 %v3026_v15 }
 0x58d   :  { %v2222_v14 = vpop.eup %2221 }
 0x58e   :  { %v2224_v13 = vpop.eup %2223  ;;  %v3028_v19 = vadd.f32 1.0, %v2222_v14  ;;  %v904_v14 = vand.u32 2147483648, %v3026_v15 }
 0x58f   :  { %v3030_v20 = vadd.f32 1.0, %v2224_v13  ;;  %v3036_v22 = vpop.eup %2225 }
 0x590   :  { %2229 = vrcp.f32 %v3028_v19  ;;  %v3039_v24 = vpop.eup %2227  ;;  %v932_v53 = vmul.f32 %v3036_v22, %v3024_v48  ;;  %vm937_vm4 = vweird.f32 %v3036_v22  ;;  %v957_v9 = vand.u32 2147483648, %v3028_v19 }
 0x591   :  { %2231 = vrcp.f32 %v3030_v20  ;;  %v894_v51 = vmul.f32 %v3039_v24, %v3026_v15  ;;  %vm913_vm15 = vweird.f32 %v3030_v20  ;;  %v919_v27 = vand.u32 2147483648, %v3030_v20  ;;  %vm3075_vm6 = vmor %vm936_vm1, %vm937_vm4 }
 0x592   :  { %v933_v11 = vsub.f32 1.0, %v932_v53  ;;  %vm899_vm3 = vweird.f32 %v3039_v24  ;;  %vm951_vm8 = vweird.f32 %v3028_v19 }
 0x593   :  { %v895_v56 = vsub.f32 1.0, %v894_v51  ;;  %vm3087_vm9 = vmor %vm898_vm7, %vm899_vm3 }
 0x594   :  { %v934_v47 = vmul.f32 %v3036_v22, %v933_v11 }
 0x595   :  { %v896_v12 = vmul.f32 %v3039_v24, %v895_v56 }
 0x596   :  { %v3041_v25 = vpop.eup %2229  ;;  %v935_v32 = vadd.f32 %v3036_v22, %v934_v47 }
 0x597   :  { %v3043_v52 = vpop.eup %2231  ;;  %v947_v55 = vmul.f32 %v3041_v25, %v3028_v19  ;;  %vm952_vm5 = vweird.f32 %v3041_v25  ;;  %v897_v1 = vadd.f32 %v3039_v24, %v896_v12 }
 0x598   :  { %v909_v44 = vmul.f32 %v3043_v52, %v3030_v20  ;;  %vm914_vm0 = vweird.f32 %v3043_v52  ;;  %vm3100_vm11 = vmor %vm951_vm8, %vm952_vm5 }
 0x599   :  { %v948_v4 = vsub.f32 1.0, %v947_v55  ;;  %v901_v8 = vsel %vm3087_vm9, %v3039_v24, %v897_v1  ;;  %vm3117_vm12 = vmor %vm913_vm15, %vm914_vm0 }
 0x59a   :  { %v866_v49 = vpop.permute.xlu1 %865  ;;  %v910_v17 = vsub.f32 1.0, %v909_v44  ;;  %v917_v44 = vand.u32 2147483647, %v3030_v20 }
 0x59b   :  { %v883_v50 = vadd.f32 %v866_v49, %v2584_v0  ;;  %v949_v23 = vmul.f32 %v3041_v25, %v948_v4  ;;  %v955_v49 = vand.u32 2147483647, %v3028_v19  ;;  %v943_v4 = vor.u32 1.1754944e-38, %v942_v7 }
 0x59c   :  { %v911_v29 = vmul.f32 %v3043_v52, %v910_v17  ;;  %vm918_vm15 = vcmp.eq.f32.partialorder %v917_v44, 8.507059e+37 }
 0x59d   :  { %v2039_v26 = vmul.f32 -1.442695, %v883_v50  ;;  %v950_v61 = vadd.f32 %v3041_v25, %v949_v23  ;;  %vm956_vm13 = vcmp.eq.f32.partialorder %v955_v49, 8.507059e+37 }
 0x59e   :  { %v912_v13 = vadd.f32 %v3043_v52, %v911_v29 }
 0x59f   :  { %2233 = vpow2.f32 %v2039_v26  ;;  %v902_v26 = vand.u32 2147483647, %v3026_v15  ;;  %v939_v15 = vsel %vm3075_vm6, %v3036_v22, %v935_v32  ;;  %v958_v22 = vor.u32 1.1754944e-38, %v957_v9 }
 0x5a0   :  { %v916_v47 = vsel %vm3117_vm12, %v3043_v52, %v912_v13  ;;  %v944_v23 = vsel %vm3092_vm10, %v943_v4, %v939_v15 }
 0x5a1   :  { %vm903_vm14 = vcmp.eq.f32.partialorder %v902_v26, 8.507059e+37 }
 0x5a2   :  { %v868_v54 = vpop.permute.xlu0 %867  ;;  %v1006_v17 = vpop.permute.xlu1 %1005 }
 0x5a3   :  { %v884_v43 = vadd.f32 %v868_v54, %v2604_v21  ;;  %v920_v54 = vor.u32 1.1754944e-38, %v919_v27 }
 0x5a5   :  { %v2234_v60 = vpop.eup %2233  ;;  %v2040_v16 = vmul.f32 -1.442695, %v884_v43  ;;  %v954_v43 = vsel %vm3100_vm11, %v3041_v25, %v950_v61  ;;  %v921_v7 = vsel %vm918_vm15, %v920_v54, %v916_v47 }
 0x5a6   :  { %v3054_v10 = vadd.f32 1.0, %v2234_v60  ;;  %v1004_v60 = vpop.permute.xlu2 %1003  ;;  %v959_v20 = vsel %vm956_vm13, %v958_v22, %v954_v43 }
 0x5a7   :  { %v1009_v6 = vmul.f32 %v1004_v60, %v944_v23  ;;  %v1010_v29 = vmul.f32 %v1006_v17, %v959_v20 }
 0x5a8   :  { %2235 = vrcp.f32 %v3054_v10  ;;  %v982_v28 = vand.u32 2147483648, %v3054_v10  ;;  %vm976_vm1 = vweird.f32 %v3054_v10 }
 0x5a9   :  { %2237 = vpow2.f32 %v2040_v16 }
 0x5aa   :  { %v862_v30 = vpop.permute.xlu0 %861  ;;  %2239 = vtanh.f32 %v882_v18  ;;  %v905_v18 = vor.u32 1.1754944e-38, %v904_v14  ;;  %v980_v14 = vand.u32 2147483647, %v3054_v10  ;;  %v983_v50 = vor.u32 1.1754944e-38, %v982_v28 }
 0x5ab   :  { %v881_v31 = vadd.f32 %v862_v30, %v2608_v34 }
 0x5ac   :  { %v906_v12 = vsel %vm903_vm14, %v905_v18, %v901_v8  ;;  %vm981_vm3 = vcmp.eq.f32.partialorder %v980_v14, 8.507059e+37 }
 0x5ad   :  { %2241 = vtanh.f32 %v881_v31 }
 0x5ae   :  { %v2236_v48 = vpop.eup %2235 }
 0x5af   :  { %v2238_v51 = vpop.eup %2237  ;;  %v972_v55 = vmul.f32 %v2236_v48, %v3054_v10  ;;  %vm977_vm0 = vweird.f32 %v2236_v48 }
 0x5b0   :  { %v970_v56 = vadd.f32 1.0, %v2238_v51  ;;  %v2240_v11 = vpop.eup %2239  ;;  %vm978_vm4 = vmor %vm976_vm1, %vm977_vm0 }
 0x5b1   :  { %v973_v25 = vsub.f32 1.0, %v972_v55  ;;  %v1012_v31 = vmul.f32 %v2240_v11, %v921_v7 }
 0x5b2   :  { %2243 = vrcp.f32 %v970_v56  ;;  %v997_v26 = vand.u32 2147483648, %v970_v56  ;;  %v995_v53 = vand.u32 2147483647, %v970_v56  ;;  %vm991_vm6 = vweird.f32 %v970_v56 }
 0x5b3   :  { %v2242_v24 = vpop.eup %2241  ;;  %v974_v27 = vmul.f32 %v2236_v48, %v973_v25  ;;  %v1014_v1 = vadd.f32 %v1012_v31, %v1010_v29 }
 0x5b4   :  { %v1011_v30 = vmul.f32 %v2242_v24, %v906_v12  ;;  %v998_v15 = vor.u32 1.1754944e-38, %v997_v26  ;;  %vm996_vm8 = vcmp.eq.f32.partialorder %v995_v53, 8.507059e+37 }
 0x5b5   :  { %v975_v61 = vadd.f32 %v2236_v48, %v974_v27 }
 0x5b6   :  { %v1013_v32 = vadd.f32 %v1011_v30, %v1009_v6 }
 0x5b7   :  { %v979_v13 = vsel %vm978_vm4, %v2236_v48, %v975_v61 }
 0x5b8   :  { %v2244_v52 = vpop.eup %2243  ;;  %2245 = vtanh.f32 %v1013_v32  ;;  %v984_v44 = vsel %vm981_vm3, %v983_v50, %v979_v13 }
 0x5b9   :  { %v987_v9 = vmul.f32 %v2244_v52, %v970_v56  ;;  %2247 = vtanh.f32 %v1014_v1  ;;  %vm992_vm5 = vweird.f32 %v2244_v52 }
 0x5ba   :  { %vm993_vm7 = vmor %vm991_vm6, %vm992_vm5 }
 0x5bb   :  { %v988_v49 = vsub.f32 1.0, %v987_v9 }
 0x5bd   :  { %v989_v51 = vmul.f32 %v2244_v52, %v988_v49 }
 0x5be   :  { %v2246_v55 = vpop.eup %2245 }
 0x5bf   :  { %v1017_v54 = vmul.f32 %v2246_v55, %v984_v44  ;;  %v990_v19 = vadd.f32 %v2244_v52, %v989_v51  ;;  %v2248_v48 = vpop.eup %2247 }
 0x5c1   :  { %1021 = vrot.lane.b32.xlu1 %v1017_v54, %s2408_s28  ;;  %v994_v10 = vsel %vm993_vm7, %v2244_v52, %v990_v19 }
 0x5c2   :  { %v999_v43 = vsel %vm996_vm8, %v998_v15, %v994_v10 }
 0x5c3   :  { %v1018_v8 = vmul.f32 %v2248_v48, %v999_v43 }
 0x5c5   :  { %1023 = vrot.lane.b32.xlu0 %v1018_v8, %s2408_s28 }
 0x633   :  { %v3132_v4 = vpop.permute.xlu1 %1021 }
 0x637   :  { %v3129_v11 = vpop.permute.xlu0 %1023 }
 0x638   :  { %1043 = vmatpush.msra.mxu1 %v3129_v11 }
 0x63a   :  { %1044 = vmatpush.msra.mxu1 %v3132_v4 }
 0x63b   :  { %2041 = vmatmul.msk.f32.vlgmr.msra.gmra.mxu1 %vm152_vm2, %v2963_v62 }
 0x643   :  { %2042 = vmatmul.msk.f32.gmra.mxu1 %vm152_vm2, %v2970_v45 }
 0x64b   :  { %2043 = vmatmul.msk.f32.gmra.mxu1 %vm152_vm2, %v2977_v63 }
 0x653   :  { %2044 = vmatmul.msk.f32.gmra.mxu1 %vm152_vm2, %v2984_v38 }
 0x65b   :  { %2045 = vmatmul.msk.f32.gmra.mxu1 %vm152_vm2, %v2991_v58 }
 0x663   :  { %2046 = vmatmul.msk.f32.gmra.mxu1 %vm152_vm2, %v2998_v3 }
 0x66b   :  { %2047 = vmatmul.msk.f32.gmra.mxu1 %vm152_vm2, %v3005_v2 }
 0x673   :  { %2048 = vmatmul.msk.f32.gmra.mxu1 %vm152_vm2, %v3012_v5 }
 0x6b8   :  { %v1046_v56 = vpop.f32.mrf.mxu1 }
 0x6b9   :  { %1078 = vrot.lane.b32.xlu1 %v1046_v56, %s2409_s29 }
 0x6c0   :  { %v1049_v60 = vpop.f32.mrf.mxu1 }
 0x6c1   :  { %1080 = vrot.lane.b32.xlu2 %v1049_v60, %s2409_s29 }
 0x6c8   :  { %v1052_v16 = vpop.f32.mrf.mxu1 }
 0x6c9   :  { %1082 = vrot.lane.b32.xlu2 %v1052_v16, %s2409_s29 }
 0x6d0   :  { %v1055_v22 = vpop.f32.mrf.mxu1 }
 0x6d1   :  { %1084 = vrot.lane.b32.xlu0 %v1055_v22, %s2409_s29 }
 0x6d8   :  { %v1058_v17 = vpop.f32.mrf.mxu1 }
 0x6e0   :  { %v1061_v18 = vpop.f32.mrf.mxu1 }
 0x6e1   :  { %1088 = vrot.lane.b32.xlu2 %v1061_v18, %s2409_s29 }
 0x6e8   :  { %v1064_v25 = vpop.f32.mrf.mxu1 }
 0x6e9   :  { %1228 = vrot.lane.b32.xlu2 %v1013_v32, %s2403_s9  ;;  %1090 = vrot.lane.b32.xlu1 %v1064_v25, %s2409_s29 }
 0x6f0   :  { %v1067_v47 = vpop.f32.mrf.mxu1 }
 0x6f1   :  { %1230 = vrot.lane.b32.xlu1 %v1014_v1, %s2403_s9  ;;  %1092 = vrot.lane.b32.xlu0 %v1067_v47, %s2409_s29 }
 0x6f9   :  { %1086 = vrot.lane.b32.xlu0 %v1058_v17, %s2409_s29 }
 0x71b   :  { %v1081_v24 = vpop.permute.xlu2 %1080 }
 0x71c   :  { %v1103_v30 = vadd.f32 %v1081_v24, %v2563_v39 }
 0x71e   :  { %v2050_v61 = vmul.f32 -1.442695, %v1103_v30 }
 0x723   :  { %v1083_v23 = vpop.permute.xlu2 %1082 }
 0x724   :  { %v1104_v12 = vadd.f32 %v1083_v23, %v2561_v37 }
 0x726   :  { %v2051_v7 = vmul.f32 -1.442695, %v1104_v12 }
 0x728   :  { %2249 = vpow2.f32 %v2051_v7 }
 0x72b   :  { %v1079_v20 = vpop.permute.xlu1 %1078 }
 0x72c   :  { %v1102_v27 = vadd.f32 %v1079_v20, %v2565_v40 }
 0x72e   :  { %v2049_v31 = vmul.f32 -1.442695, %v1102_v27  ;;  %v2250_v52 = vpop.eup %2249 }
 0x72f   :  { %v3157_v9 = vadd.f32 1.0, %v2250_v52 }
 0x730   :  { %2251 = vpow2.f32 %v2049_v31 }
 0x731   :  { %vm1161_vm11 = vweird.f32 %v3157_v9  ;;  %v1167_v31 = vand.u32 2147483648, %v3157_v9 }
 0x736   :  { %v2252_v1 = vpop.eup %2251 }
 0x737   :  { %v3159_v13 = vadd.f32 1.0, %v2252_v1 }
 0x739   :  { %vm1123_vm0 = vweird.f32 %v3159_v13 }
 0x73b   :  { %v1089_v16 = vpop.permute.xlu2 %1088 }
 0x73c   :  { %v1107_v23 = vadd.f32 %v1089_v16, %v2610_v35 }
 0x743   :  { %v1085_v6 = vpop.permute.xlu0 %1084 }
 0x744   :  { %v1105_v29 = vadd.f32 %v1085_v6, %v2568_v42 }
 0x746   :  { %v2052_v32 = vmul.f32 -1.442695, %v1105_v29  ;;  %v1165_v29 = vand.u32 2147483647, %v3157_v9 }
 0x748   :  { %2253 = vpow2.f32 %v2052_v32  ;;  %vm3225_vm3 = vcmp.eq.f32.partialorder %v1165_v29, 8.507059e+37 }
 0x749   :  { %2255 = vpow2.f32 %v2050_v61 }
 0x74a   :  { %2257 = vrcp.f32 %v3157_v9 }
 0x74b   :  { %2259 = vrcp.f32 %v3159_v13 }
 0x74e   :  { %v2254_v28 = vpop.eup %2253 }
 0x74f   :  { %v2256_v14 = vpop.eup %2255  ;;  %v3161_v49 = vadd.f32 1.0, %v2254_v28 }
 0x750   :  { %v3163_v50 = vadd.f32 1.0, %v2256_v14  ;;  %v3169_v51 = vpop.eup %2257 }
 0x751   :  { %2261 = vrcp.f32 %v3161_v49  ;;  %v3172_v55 = vpop.eup %2259  ;;  %v1157_v10 = vmul.f32 %v3169_v51, %v3157_v9  ;;  %vm1162_vm12 = vweird.f32 %v3169_v51  ;;  %v1182_v14 = vand.u32 2147483648, %v3161_v49 }
 0x752   :  { %2263 = vrcp.f32 %v3163_v50  ;;  %v1119_v15 = vmul.f32 %v3172_v55, %v3159_v13  ;;  %vm1138_vm9 = vweird.f32 %v3163_v50  ;;  %v1144_v6 = vand.u32 2147483648, %v3163_v50  ;;  %vm3208_vm15 = vmor %vm1161_vm11, %vm1162_vm12 }
 0x753   :  { %v1158_v22 = vsub.f32 1.0, %v1157_v10  ;;  %vm1124_vm13 = vweird.f32 %v3172_v55  ;;  %v1129_v9 = vand.u32 2147483648, %v3159_v13  ;;  %vm1176_vm1 = vweird.f32 %v3161_v49 }
 0x754   :  { %v1120_v60 = vsub.f32 1.0, %v1119_v15  ;;  %vm3220_vm4 = vmor %vm1123_vm0, %vm1124_vm13  ;;  %v1127_v10 = vand.u32 2147483647, %v3159_v13 }
 0x755   :  { %v1159_v20 = vmul.f32 %v3169_v51, %v1158_v22 }
 0x756   :  { %v1121_v27 = vmul.f32 %v3172_v55, %v1120_v60  ;;  %v1145_v60 = vor.u32 1.1754944e-38, %v1144_v6  ;;  %vm1128_vm8 = vcmp.eq.f32.partialorder %v1127_v10, 8.507059e+37 }
 0x757   :  { %v3174_v44 = vpop.eup %2261  ;;  %v1160_v61 = vadd.f32 %v3169_v51, %v1159_v20 }
 0x758   :  { %v3176_v19 = vpop.eup %2263  ;;  %v1172_v48 = vmul.f32 %v3174_v44, %v3161_v49  ;;  %vm1177_vm14 = vweird.f32 %v3174_v44  ;;  %v1122_v1 = vadd.f32 %v3172_v55, %v1121_v27 }
 0x759   :  { %v1134_v43 = vmul.f32 %v3176_v19, %v3163_v50  ;;  %vm1139_vm10 = vweird.f32 %v3176_v19  ;;  %vm3233_vm5 = vmor %vm1176_vm1, %vm1177_vm14  ;;  %v1164_v13 = vsel %vm3208_vm15, %v3169_v51, %v1160_v61  ;;  %v1183_v51 = vor.u32 1.1754944e-38, %v1182_v14 }
 0x75a   :  { %v1173_v17 = vsub.f32 1.0, %v1172_v48  ;;  %vm3250_vm6 = vmor %vm1138_vm9, %vm1139_vm10 }
 0x75b   :  { %v1091_v26 = vpop.permute.xlu1 %1090  ;;  %v1135_v24 = vsub.f32 1.0, %v1134_v43 }
 0x75c   :  { %v1108_v53 = vadd.f32 %v1091_v26, %v2584_v0  ;;  %v1174_v12 = vmul.f32 %v3174_v44, %v1173_v17  ;;  %v1126_v17 = vsel %vm3220_vm4, %v3172_v55, %v1122_v1 }
 0x75d   :  { %v1136_v30 = vmul.f32 %v3176_v19, %v1135_v24  ;;  %v1229_v24 = vpop.permute.xlu2 %1228 }
 0x75e   :  { %v2053_v54 = vmul.f32 -1.442695, %v1108_v53  ;;  %v1175_v52 = vadd.f32 %v3174_v44, %v1174_v12  ;;  %v1130_v12 = vor.u32 1.1754944e-38, %v1129_v9 }
 0x75f   :  { %v1137_v53 = vadd.f32 %v3176_v19, %v1136_v30 }
 0x760   :  { %2265 = vpow2.f32 %v2053_v54  ;;  %v1180_v54 = vand.u32 2147483647, %v3161_v49  ;;  %v1179_v16 = vsel %vm3233_vm5, %v3174_v44, %v1175_v52  ;;  %v1131_v29 = vsel %vm1128_vm8, %v1130_v12, %v1126_v17 }
 0x761   :  { %v1141_v27 = vsel %vm3250_vm6, %v3176_v19, %v1137_v53 }
 0x762   :  { %vm1181_vm7 = vcmp.eq.f32.partialorder %v1180_v54, 8.507059e+37 }
 0x763   :  { %v1093_v8 = vpop.permute.xlu0 %1092  ;;  %v1231_v20 = vpop.permute.xlu1 %1230 }
 0x764   :  { %v1109_v56 = vadd.f32 %v1093_v8, %v2604_v21 }
 0x766   :  { %v2266_v18 = vpop.eup %2265  ;;  %v2054_v25 = vmul.f32 -1.442695, %v1109_v56  ;;  %v1142_v56 = vand.u32 2147483647, %v3163_v50  ;;  %v1184_v50 = vsel %vm1181_vm7, %v1183_v51, %v1179_v16 }
 0x767   :  { %v3187_v47 = vadd.f32 1.0, %v2266_v18 }
 0x768   :  { %vm1143_vm9 = vcmp.eq.f32.partialorder %v1142_v56, 8.507059e+37 }
 0x769   :  { %2267 = vrcp.f32 %v3187_v47  ;;  %v1146_v61 = vsel %vm1143_vm9, %v1145_v60, %v1141_v27  ;;  %v1207_v9 = vand.u32 2147483648, %v3187_v47  ;;  %vm1201_vm11 = vweird.f32 %v3187_v47 }
 0x76a   :  { %2269 = vpow2.f32 %v2054_v25  ;;  %v1168_v25 = vor.u32 1.1754944e-38, %v1167_v31  ;;  %v1235_v31 = vmul.f32 %v1231_v20, %v1184_v50  ;;  %v1205_v54 = vand.u32 2147483647, %v3187_v47 }
 0x76b   :  { %v1087_v7 = vpop.permute.xlu0 %1086  ;;  %2271 = vtanh.f32 %v1107_v23 }
 0x76c   :  { %v1106_v32 = vadd.f32 %v1087_v7, %v2608_v34  ;;  %v1169_v6 = vsel %vm3225_vm3, %v1168_v25, %v1164_v13  ;;  %vm1206_vm13 = vcmp.eq.f32.partialorder %v1205_v54, 8.507059e+37 }
 0x76d   :  { %v1234_v7 = vmul.f32 %v1229_v24, %v1169_v6 }
 0x76e   :  { %2273 = vtanh.f32 %v1106_v32 }
 0x76f   :  { %v2268_v26 = vpop.eup %2267 }
 0x770   :  { %v2270_v48 = vpop.eup %2269  ;;  %v1197_v8 = vmul.f32 %v2268_v26, %v3187_v47  ;;  %vm1202_vm10 = vweird.f32 %v2268_v26 }
 0x771   :  { %v1195_v22 = vadd.f32 1.0, %v2270_v48  ;;  %v2272_v18 = vpop.eup %2271  ;;  %vm1203_vm12 = vmor %vm1201_vm11, %vm1202_vm10  ;;  %v1208_v48 = vor.u32 1.1754944e-38, %v1207_v9 }
 0x772   :  { %v1198_v44 = vsub.f32 1.0, %v1197_v8  ;;  %v1237_v52 = vmul.f32 %v2272_v18, %v1146_v61 }
 0x773   :  { %2275 = vrcp.f32 %v1195_v22  ;;  %v1222_v43 = vand.u32 2147483648, %v1195_v22  ;;  %v1220_v56 = vand.u32 2147483647, %v1195_v22  ;;  %vm1216_vm15 = vweird.f32 %v1195_v22 }
 0x774   :  { %v2274_v55 = vpop.eup %2273  ;;  %v1199_v30 = vmul.f32 %v2268_v26, %v1198_v44  ;;  %v1239_v14 = vadd.f32 %v1237_v52, %v1235_v31 }
 0x775   :  { %v1236_v32 = vmul.f32 %v2274_v55, %v1131_v29  ;;  %v1223_v17 = vor.u32 1.1754944e-38, %v1222_v43  ;;  %vm1221_vm1 = vcmp.eq.f32.partialorder %v1220_v56, 8.507059e+37 }
 0x776   :  { %v1200_v28 = vadd.f32 %v2268_v26, %v1199_v30 }
 0x777   :  { %v1238_v1 = vadd.f32 %v1236_v32, %v1234_v7 }
 0x778   :  { %v1204_v15 = vsel %vm1203_vm12, %v2268_v26, %v1200_v28 }
 0x779   :  { %v2276_v19 = vpop.eup %2275  ;;  %2277 = vtanh.f32 %v1238_v1  ;;  %v1209_v49 = vsel %vm1206_vm13, %v1208_v48, %v1204_v15 }
 0x77a   :  { %v1212_v53 = vmul.f32 %v2276_v19, %v1195_v22  ;;  %2279 = vtanh.f32 %v1239_v14  ;;  %vm1217_vm14 = vweird.f32 %v2276_v19 }
 0x77b   :  { %vm1218_vm0 = vmor %vm1216_vm15, %vm1217_vm14 }
 0x77c   :  { %v1213_v10 = vsub.f32 1.0, %v1212_v53 }
 0x77e   :  { %v1214_v8 = vmul.f32 %v2276_v19, %v1213_v10 }
 0x77f   :  { %v2278_v60 = vpop.eup %2277 }
 0x780   :  { %v1242_v13 = vmul.f32 %v2278_v60, %v1209_v49  ;;  %v1215_v16 = vadd.f32 %v2276_v19, %v1214_v8  ;;  %v2280_v26 = vpop.eup %2279 }
 0x782   :  { %1246 = vrot.lane.b32.xlu1 %v1242_v13, %s2410_s30  ;;  %v1219_v47 = vsel %vm1218_vm0, %v2276_v19, %v1215_v16 }
 0x783   :  { %v1224_v18 = vsel %vm1221_vm1, %v1223_v17, %v1219_v47 }
 0x784   :  { %v1243_v25 = vmul.f32 %v2280_v26, %v1224_v18 }
 0x786   :  { %1248 = vrot.lane.b32.xlu0 %v1243_v25, %s2410_s30 }
 0x7f4   :  { %v3265_v23 = vpop.permute.xlu1 %1246 }
 0x7f8   :  { %v3262_v24 = vpop.permute.xlu0 %1248 }
 0x7f9   :  { %1268 = vmatpush.msra.mxu2 %v3262_v24 }
 0x7fb   :  { %1269 = vmatpush.msra.mxu2 %v3265_v23 }
 0x7fc   :  { %2055 = vmatmul.msk.f32.vlgmr.msra.gmra.mxu2 %vm152_vm2, %v2963_v62 }
 0x804   :  { %2056 = vmatmul.msk.f32.gmra.mxu2 %vm152_vm2, %v2970_v45 }
 0x80c   :  { %2057 = vmatmul.msk.f32.gmra.mxu2 %vm152_vm2, %v2977_v63 }
 0x814   :  { %2058 = vmatmul.msk.f32.gmra.mxu2 %vm152_vm2, %v2984_v38 }
 0x81c   :  { %2059 = vmatmul.msk.f32.gmra.mxu2 %vm152_vm2, %v2991_v58 }
 0x824   :  { %2060 = vmatmul.msk.f32.gmra.mxu2 %vm152_vm2, %v2998_v3 }
 0x82c   :  { %2061 = vmatmul.msk.f32.gmra.mxu2 %vm152_vm2, %v3005_v2 }
 0x834   :  { %2062 = vmatmul.msk.f32.gmra.mxu2 %vm152_vm2, %v3012_v5 }
 0x87f   :  { %v1271_v62 = vpop.f32.mrf.mxu2 }
 0x880   :  { %1303 = vrot.lane.b32.xlu1 %v1271_v62, %s2411_s5 }
 0x887   :  { %v1274_v45 = vpop.f32.mrf.mxu2 }
 0x888   :  { %1305 = vrot.lane.b32.xlu2 %v1274_v45, %s2411_s5 }
 0x88f   :  { %v1277_v63 = vpop.f32.mrf.mxu2 }
 0x890   :  { %1307 = vrot.lane.b32.xlu2 %v1277_v63, %s2411_s5 }
 0x897   :  { %v1280_v38 = vpop.f32.mrf.mxu2 }
 0x898   :  { %1309 = vrot.lane.b32.xlu0 %v1280_v38, %s2411_s5 }
 0x89f   :  { %v1283_v22 = vpop.f32.mrf.mxu2 }
 0x8a7   :  { %v1286_v58 = vpop.f32.mrf.mxu2 }
 0x8a8   :  { %1313 = vrot.lane.b32.xlu2 %v1286_v58, %s2411_s5 }
 0x8af   :  { %v1289_v51 = vpop.f32.mrf.mxu2 }
 0x8b0   :  { %1453 = vrot.lane.b32.xlu2 %v1238_v1, %s2403_s9  ;;  %1315 = vrot.lane.b32.xlu1 %v1289_v51, %s2411_s5 }
 0x8b7   :  { %v1292_v3 = vpop.f32.mrf.mxu2 }
 0x8b8   :  { %1455 = vrot.lane.b32.xlu1 %v1239_v14, %s2403_s9  ;;  %1317 = vrot.lane.b32.xlu0 %v1292_v3, %s2411_s5 }
 0x8c0   :  { %1311 = vrot.lane.b32.xlu0 %v1283_v22, %s2411_s5 }
 0x8e2   :  { %v1306_v2 = vpop.permute.xlu2 %1305 }
 0x8e3   :  { %v1328_v6 = vadd.f32 %v1306_v2, %v2563_v39 }
 0x8e5   :  { %v2064_v7 = vmul.f32 -1.442695, %v1328_v6 }
 0x8ea   :  { %v1308_v5 = vpop.permute.xlu2 %1307 }
 0x8eb   :  { %v1329_v12 = vadd.f32 %v1308_v5, %v2561_v37 }
 0x8ed   :  { %v2065_v50 = vmul.f32 -1.442695, %v1329_v12 }
 0x8ef   :  { %2281 = vpow2.f32 %v2065_v50 }
 0x8f2   :  { %v1304_v20 = vpop.permute.xlu1 %1303 }
 0x8f3   :  { %v1327_v44 = vadd.f32 %v1304_v20, %v2565_v40 }
 0x8f5   :  { %v2063_v29 = vmul.f32 -1.442695, %v1327_v44  ;;  %v2282_v31 = vpop.eup %2281 }
 0x8f6   :  { %v3290_v52 = vadd.f32 1.0, %v2282_v31 }
 0x8f7   :  { %2283 = vpow2.f32 %v2063_v29 }
 0x8f8   :  { %vm1386_vm5 = vweird.f32 %v3290_v52  ;;  %v1390_v2 = vand.u32 2147483647, %v3290_v52  ;;  %v1392_v12 = vand.u32 2147483648, %v3290_v52 }
 0x8fa   :  { %vm3358_vm13 = vcmp.eq.f32.partialorder %v1390_v2, 8.507059e+37 }
 0x8fd   :  { %v2284_v32 = vpop.eup %2283 }
 0x8fe   :  { %v3292_v28 = vadd.f32 1.0, %v2284_v32 }
 0x900   :  { %vm1348_vm10 = vweird.f32 %v3292_v28 }
 0x902   :  { %v1314_v47 = vpop.permute.xlu2 %1313 }
 0x903   :  { %v1332_v38 = vadd.f32 %v1314_v47, %v2610_v35  ;;  %v3452_v47 = vld [vmem:[%s3684_s2 + $0x30] sm:$0xff] }
 0x90a   :  { %v1310_v27 = vpop.permute.xlu0 %1309 }
 0x90b   :  { %v1330_v55 = vadd.f32 %v1310_v27, %v2568_v42 }
 0x90d   :  { %v2066_v30 = vmul.f32 -1.442695, %v1330_v55 }
 0x90f   :  { %2285 = vpow2.f32 %v2066_v30  ;;  %v1354_v30 = vand.u32 2147483648, %v3292_v28 }
 0x910   :  { %2287 = vpow2.f32 %v2064_v7 }
 0x911   :  { %2289 = vrcp.f32 %v3290_v52 }
 0x912   :  { %2291 = vrcp.f32 %v3292_v28 }
 0x915   :  { %v2286_v61 = vpop.eup %2285 }
 0x916   :  { %v2288_v1 = vpop.eup %2287  ;;  %v3294_v19 = vadd.f32 1.0, %v2286_v61 }
 0x917   :  { %v3296_v14 = vadd.f32 1.0, %v2288_v1  ;;  %v3302_v53 = vpop.eup %2289 }
 0x918   :  { %2293 = vrcp.f32 %v3294_v19  ;;  %v3305_v15 = vpop.eup %2291  ;;  %v1382_v56 = vmul.f32 %v3302_v53, %v3290_v52  ;;  %vm1387_vm6 = vweird.f32 %v3302_v53  ;;  %v1407_v29 = vand.u32 2147483648, %v3294_v19 }
 0x919   :  { %2295 = vrcp.f32 %v3296_v14  ;;  %v1344_v8 = vmul.f32 %v3305_v15, %v3292_v28  ;;  %vm1363_vm4 = vweird.f32 %v3296_v14  ;;  %v1369_v3 = vand.u32 2147483648, %v3296_v14  ;;  %vm3341_vm9 = vmor %vm1386_vm5, %vm1387_vm6 }
 0x91a   :  { %v1383_v26 = vsub.f32 1.0, %v1382_v56  ;;  %vm1349_vm7 = vweird.f32 %v3305_v15  ;;  %vm1401_vm11 = vweird.f32 %v3294_v19  ;;  %v1405_v32 = vand.u32 2147483647, %v3294_v19 }
 0x91b   :  { %v1345_v17 = vsub.f32 1.0, %v1344_v8  ;;  %vm3353_vm12 = vmor %vm1348_vm10, %vm1349_vm7  ;;  %v1352_v52 = vand.u32 2147483647, %v3292_v28  ;;  %v1370_v8 = vor.u32 1.1754944e-38, %v1369_v3 }
 0x91c   :  { %v1384_v22 = vmul.f32 %v3302_v53, %v1383_v26  ;;  %vm1406_vm0 = vcmp.eq.f32.partialorder %v1405_v32, 8.507059e+37 }
 0x91d   :  { %v1346_v51 = vmul.f32 %v3305_v15, %v1345_v17  ;;  %v1454_v17 = vpop.permute.xlu2 %1453  ;;  %vm1353_vm1 = vcmp.eq.f32.partialorder %v1352_v52, 8.507059e+37 }
 0x91e   :  { %v3307_v10 = vpop.eup %2293  ;;  %v1385_v27 = vadd.f32 %v3302_v53, %v1384_v22 }
 0x91f   :  { %v3309_v43 = vpop.eup %2295  ;;  %v1397_v60 = vmul.f32 %v3307_v10, %v3294_v19  ;;  %vm1402_vm8 = vweird.f32 %v3307_v10  ;;  %v1347_v6 = vadd.f32 %v3305_v15, %v1346_v51 }
 0x920   :  { %v1359_v49 = vmul.f32 %v3309_v43, %v3296_v14  ;;  %vm1364_vm3 = vweird.f32 %v3309_v43  ;;  %vm3366_vm14 = vmor %vm1401_vm11, %vm1402_vm8  ;;  %v1389_v28 = vsel %vm3341_vm9, %v3302_v53, %v1385_v27  ;;  %v1408_v53 = vor.u32 1.1754944e-38, %v1407_v29 }
 0x921   :  { %v1398_v18 = vsub.f32 1.0, %v1397_v60  ;;  %vm3383_vm15 = vmor %vm1363_vm4, %vm1364_vm3 }
 0x922   :  { %v1316_v9 = vpop.permute.xlu1 %1315  ;;  %v1360_v63 = vsub.f32 1.0, %v1359_v49  ;;  %v1351_v49 = vsel %vm3353_vm12, %v3305_v15, %v1347_v6 }
 0x923   :  { %v1333_v54 = vadd.f32 %v1316_v9, %v2584_v0  ;;  %v1399_v58 = vmul.f32 %v3307_v10, %v1398_v18  ;;  %v1355_v18 = vor.u32 1.1754944e-38, %v1354_v30 }
 0x924   :  { %v1361_v5 = vmul.f32 %v3309_v43, %v1360_v63 }
 0x925   :  { %v2067_v48 = vmul.f32 -1.442695, %v1333_v54  ;;  %v1400_v55 = vadd.f32 %v3307_v10, %v1399_v58  ;;  %v1356_v63 = vsel %vm1353_vm1, %v1355_v18, %v1351_v49  ;;  %v3424_v49 = vld [vmem:[%s3684_s2 + $0x10] sm:$0xff] }
 0x926   :  { %v1362_v31 = vadd.f32 %v3309_v43, %v1361_v5 }
 0x927   :  { %2297 = vpow2.f32 %v2067_v48  ;;  %v1367_v48 = vand.u32 2147483647, %v3296_v14  ;;  %v1404_v56 = vsel %vm3366_vm14, %v3307_v10, %v1400_v55 }
 0x928   :  { %v1409_v14 = vsel %vm1406_vm0, %v1408_v53, %v1404_v56  ;;  %v3410_v56 = vld [vmem:[%s3684_s2] sm:$0xff]  ;;  %v3459_v53 = vld [vmem:[%s3684_s2 + $0x38] sm:$0xff] }
 0x929   :  { %vm1368_vm4 = vcmp.eq.f32.partialorder %v1367_v48, 8.507059e+37 }
 0x92a   :  { %v1318_v13 = vpop.permute.xlu0 %1317  ;;  %v1456_v26 = vpop.permute.xlu1 %1455 }
 0x92b   :  { %v1334_v16 = vadd.f32 %v1318_v13, %v2604_v21  ;;  %v1460_v58 = vmul.f32 %v1456_v26, %v1409_v14 }
 0x92d   :  { %v2298_v25 = vpop.eup %2297  ;;  %v2068_v62 = vmul.f32 -1.442695, %v1334_v16  ;;  %v1393_v16 = vor.u32 1.1754944e-38, %v1392_v12 }
 0x92e   :  { %v3320_v45 = vadd.f32 1.0, %v2298_v25  ;;  %v1366_v25 = vsel %vm3383_vm15, %v3309_v43, %v1362_v31 }
 0x92f   :  { %v1371_v3 = vsel %vm1368_vm4, %v1370_v8, %v1366_v25 }
 0x930   :  { %2299 = vrcp.f32 %v3320_v45  ;;  %vm1426_vm5 = vweird.f32 %v3320_v45  ;;  %v1430_v55 = vand.u32 2147483647, %v3320_v45 }
 0x931   :  { %2301 = vpow2.f32 %v2068_v62  ;;  %v1394_v62 = vsel %vm3358_vm13, %v1393_v16, %v1389_v28  ;;  %v3438_v16 = vld [vmem:[%s3684_s2 + $0x20] sm:$0xff] }
 0x932   :  { %v1312_v20 = vpop.permute.xlu0 %1311  ;;  %2303 = vtanh.f32 %v1332_v38  ;;  %v1459_v22 = vmul.f32 %v1454_v17, %v1394_v62  ;;  %vm1431_vm7 = vcmp.eq.f32.partialorder %v1430_v55, 8.507059e+37  ;;  %v3445_v17 = vld [vmem:[%s3684_s2 + $0x28] sm:$0xff] }
 0x933   :  { %v1331_v44 = vadd.f32 %v1312_v20, %v2608_v34 }
 0x935   :  { %2305 = vtanh.f32 %v1331_v44  ;;  %v1432_v44 = vand.u32 2147483648, %v3320_v45 }
 0x936   :  { %v2300_v7 = vpop.eup %2299 }
 0x937   :  { %v2302_v1 = vpop.eup %2301  ;;  %v1422_v54 = vmul.f32 %v2300_v7, %v3320_v45  ;;  %vm1427_vm3 = vweird.f32 %v2300_v7  ;;  %v1433_v29 = vor.u32 1.1754944e-38, %v1432_v44 }
 0x938   :  { %v1420_v60 = vadd.f32 1.0, %v2302_v1  ;;  %v2304_v13 = vpop.eup %2303  ;;  %vm1428_vm6 = vmor %vm1426_vm5, %vm1427_vm3 }
 0x939   :  { %v1423_v10 = vsub.f32 1.0, %v1422_v54  ;;  %v1462_v2 = vmul.f32 %v2304_v13, %v1371_v3  ;;  %v3431_v13 = vld [vmem:[%s3684_s2 + $0x18] sm:$0xff] }
 0x93a   :  { %2307 = vrcp.f32 %v1420_v60  ;;  %v1447_v30 = vand.u32 2147483648, %v1420_v60  ;;  %v1445_v32 = vand.u32 2147483647, %v1420_v60  ;;  %vm1441_vm9 = vweird.f32 %v1420_v60 }
 0x93b   :  { %v2306_v15 = vpop.eup %2305  ;;  %v1424_v38 = vmul.f32 %v2300_v7, %v1423_v10  ;;  %v3394_v12 = vadd.f32 %v1462_v2, %v1460_v58 }
 0x93c   :  { %v1461_v51 = vmul.f32 %v2306_v15, %v1356_v63  ;;  %v1448_v54 = vor.u32 1.1754944e-38, %v1447_v30  ;;  %vm1446_vm11 = vcmp.eq.f32.partialorder %v1445_v32, 8.507059e+37 }
 0x93d   :  { %v1425_v20 = vadd.f32 %v2300_v7, %v1424_v38 }
 0x93e   :  { %v3392_v5 = vadd.f32 %v1461_v51, %v1459_v22 }
 0x93f   :  { %v1429_v6 = vsel %vm1428_vm6, %v2300_v7, %v1425_v20 }
 0x940   :  { %v2308_v43 = vpop.eup %2307  ;;  %2309 = vtanh.f32 %v3392_v5  ;;  %v1434_v52 = vsel %vm1431_vm7, %v1433_v29, %v1429_v6 }
 0x941   :  { %v1437_v27 = vmul.f32 %v2308_v43, %v1420_v60  ;;  %2311 = vtanh.f32 %v3394_v12  ;;  %vm1442_vm8 = vweird.f32 %v2308_v43  ;;  %v3417_v60 = vld [vmem:[%s3684_s2 + $0x8] sm:$0xff]  ;;  %s2414_s2 = smov 116  }
 0x942   :  { %vm1443_vm10 = vmor %vm1441_vm9, %vm1442_vm8 }
 0x943   :  { %v1438_v50 = vsub.f32 1.0, %v1437_v27 }
 0x945   :  { %v1439_v31 = vmul.f32 %v2308_v43, %v1438_v50 }
 0x946   :  { %v2310_v61 = vpop.eup %2309 }
 0x947   :  { %v1467_v1 = vmul.f32 %v2310_v61, %v1434_v52  ;;  %v1440_v9 = vadd.f32 %v2308_v43, %v1439_v31  ;;  %v2312_v7 = vpop.eup %2311 }
 0x949   :  { %1471 = vrot.lane.b32.xlu1 %v1467_v1, %s2412_s6  ;;  %v1444_v45 = vsel %vm1443_vm10, %v2308_v43, %v1440_v9 }
 0x94a   :  { %v1449_v48 = vsel %vm1446_vm11, %v1448_v54, %v1444_v45 }
 0x94b   :  { %v1468_v8 = vmul.f32 %v2312_v7, %v1449_v48 }
 0x94d   :  { %1473 = vrot.lane.b32.xlu0 %v1468_v8, %s2412_s6 }
 0x9bb   :  { %v3404_v28 = vpop.permute.xlu1 %1471 }
 0x9bf   :  { %v3401_v19 = vpop.permute.xlu0 %1473 }
 0x9c0   :  { %1493 = vmatpush.msra.mxu3 %v3401_v19 }
 0x9c2   :  { %1494 = vmatpush.msra.mxu3 %v3404_v28 }
 0x9c3   :  { %2069 = vmatmul.msk.f32.vlgmr.msra.gmra.mxu3 %vm152_vm2, %v3410_v56 }
 0x9cb   :  { %2070 = vmatmul.msk.f32.gmra.mxu3 %vm152_vm2, %v3417_v60 }
 0x9d3   :  { %2071 = vmatmul.msk.f32.gmra.mxu3 %vm152_vm2, %v3424_v49 }
 0x9db   :  { %2072 = vmatmul.msk.f32.gmra.mxu3 %vm152_vm2, %v3431_v13 }
 0x9e3   :  { %2073 = vmatmul.msk.f32.gmra.mxu3 %vm152_vm2, %v3438_v16 }
 0x9eb   :  { %2074 = vmatmul.msk.f32.gmra.mxu3 %vm152_vm2, %v3445_v17 }
 0x9f3   :  { %2075 = vmatmul.msk.f32.gmra.mxu3 %vm152_vm2, %v3452_v47 }
 0x9fb   :  { %2076 = vmatmul.msk.f32.gmra.mxu3 %vm152_vm2, %v3459_v53 }
 0xa46   :  { %v1496_v26 = vpop.f32.mrf.mxu3 }
 0xa47   :  { %1528 = vrot.lane.b32.xlu1 %v1496_v26, %s2413_s0 }
 0xa4e   :  { %v1499_v18 = vpop.f32.mrf.mxu3 }
 0xa4f   :  { %1530 = vrot.lane.b32.xlu2 %v1499_v18, %s2413_s0 }
 0xa56   :  { %v1502_v10 = vpop.f32.mrf.mxu3 }
 0xa57   :  { %1532 = vrot.lane.b32.xlu2 %v1502_v10, %s2413_s0 }
 0xa5e   :  { %v1505_v25 = vpop.f32.mrf.mxu3 }
 0xa5f   :  { %1534 = vrot.lane.b32.xlu0 %v1505_v25, %s2413_s0 }
 0xa66   :  { %v1508_v15 = vpop.f32.mrf.mxu3 }
 0xa6e   :  { %v1511_v62 = vpop.f32.mrf.mxu3 }
 0xa6f   :  { %1538 = vrot.lane.b32.xlu2 %v1511_v62, %s2413_s0 }
 0xa76   :  { %v1514_v14 = vpop.f32.mrf.mxu3 }
 0xa77   :  { %1678 = vrot.lane.b32.xlu2 %v3392_v5, %s2403_s9  ;;  %1540 = vrot.lane.b32.xlu1 %v1514_v14, %s2413_s0 }
 0xa7e   :  { %v1517_v63 = vpop.f32.mrf.mxu3 }
 0xa7f   :  { %1680 = vrot.lane.b32.xlu1 %v3394_v12, %s2403_s9  ;;  %1542 = vrot.lane.b32.xlu0 %v1517_v63, %s2413_s0 }
 0xa87   :  { %1536 = vrot.lane.b32.xlu0 %v1508_v15, %s2413_s0 }
 0xaa9   :  { %v1531_v38 = vpop.permute.xlu2 %1530 }
 0xaaa   :  { %v1553_v43 = vadd.f32 %v1531_v38, %v2563_v39 }
 0xaac   :  { %v2078_v55 = vmul.f32 -1.442695, %v1553_v43 }
 0xab1   :  { %v1533_v22 = vpop.permute.xlu2 %1532 }
 0xab2   :  { %v1554_v51 = vadd.f32 %v1533_v22, %v2561_v37 }
 0xab4   :  { %v2079_v5 = vmul.f32 -1.442695, %v1554_v51 }
 0xab6   :  { %2313 = vpow2.f32 %v2079_v5 }
 0xab9   :  { %v1529_v58 = vpop.permute.xlu1 %1528 }
 0xaba   :  { %v1552_v3 = vadd.f32 %v1529_v58, %v2565_v40 }
 0xabc   :  { %v2077_v44 = vmul.f32 -1.442695, %v1552_v3  ;;  %v2314_v12 = vpop.eup %2313 }
 0xabd   :  { %v3471_v29 = vadd.f32 1.0, %v2314_v12 }
 0xabe   :  { %2315 = vpow2.f32 %v2077_v44 }
 0xabf   :  { %vm1611_vm14 = vweird.f32 %v3471_v29 }
 0xac4   :  { %v2316_v6 = vpop.eup %2315 }
 0xac5   :  { %v3473_v31 = vadd.f32 1.0, %v2316_v6  ;;  %v1617_v6 = vand.u32 2147483648, %v3471_v29 }
 0xac7   :  { %vm1573_vm3 = vweird.f32 %v3473_v31 }
 0xac9   :  { %v1539_v14 = vpop.permute.xlu2 %1538 }
 0xad1   :  { %v1535_v2 = vpop.permute.xlu0 %1534 }
 0xad2   :  { %v1555_v20 = vadd.f32 %v1535_v2, %v2568_v42  ;;  %v1557_v2 = vadd.f32 %v1539_v14, %v2610_v35 }
 0xad4   :  { %v2080_v27 = vmul.f32 -1.442695, %v1555_v20 }
 0xad6   :  { %2317 = vpow2.f32 %v2080_v27  ;;  %v1615_v27 = vand.u32 2147483647, %v3471_v29 }
 0xad7   :  { %2319 = vpow2.f32 %v2078_v55 }
 0xad8   :  { %2321 = vrcp.f32 %v3471_v29  ;;  %vm3539_vm7 = vcmp.eq.f32.partialorder %v1615_v27, 8.507059e+37 }
 0xad9   :  { %2323 = vrcp.f32 %v3473_v31 }
 0xadc   :  { %v2318_v50 = vpop.eup %2317 }
 0xadd   :  { %v2320_v30 = vpop.eup %2319  ;;  %v3475_v32 = vadd.f32 1.0, %v2318_v50 }
 0xade   :  { %v3477_v61 = vadd.f32 1.0, %v2320_v30  ;;  %v3483_v1 = vpop.eup %2321 }
 0xadf   :  { %2325 = vrcp.f32 %v3475_v32  ;;  %v3486_v54 = vpop.eup %2323  ;;  %v1607_v26 = vmul.f32 %v3483_v1, %v3471_v29  ;;  %vm1612_vm15 = vweird.f32 %v3483_v1  ;;  %v1579_v29 = vand.u32 2147483648, %v3473_v31 }
 0xae0   :  { %2327 = vrcp.f32 %v3477_v61  ;;  %v1569_v8 = vmul.f32 %v3486_v54, %v3473_v31  ;;  %vm1588_vm12 = vweird.f32 %v3477_v61  ;;  %v1594_v44 = vand.u32 2147483648, %v3477_v61  ;;  %vm3522_vm4 = vmor %vm1611_vm14, %vm1612_vm15 }
 0xae1   :  { %v1608_v63 = vsub.f32 1.0, %v1607_v26  ;;  %vm1574_vm0 = vweird.f32 %v3486_v54  ;;  %vm1626_vm5 = vweird.f32 %v3475_v32 }
 0xae2   :  { %v1570_v62 = vsub.f32 1.0, %v1569_v8  ;;  %v1632_v8 = vand.u32 2147483648, %v3475_v32  ;;  %vm3534_vm6 = vmor %vm1573_vm3, %vm1574_vm0 }
 0xae3   :  { %v1609_v20 = vmul.f32 %v3483_v1, %v1608_v63 }
 0xae4   :  { %v1571_v5 = vmul.f32 %v3486_v54, %v1570_v62 }
 0xae5   :  { %v3488_v45 = vpop.eup %2325  ;;  %v1610_v30 = vadd.f32 %v3483_v1, %v1609_v20 }
 0xae6   :  { %v3490_v48 = vpop.eup %2327  ;;  %v1622_v18 = vmul.f32 %v3488_v45, %v3475_v32  ;;  %vm1627_vm1 = vweird.f32 %v3488_v45 }
 0xae7   :  { %v1584_v10 = vmul.f32 %v3490_v48, %v3477_v61  ;;  %vm1589_vm13 = vweird.f32 %v3490_v48  ;;  %vm3547_vm8 = vmor %vm1626_vm5, %vm1627_vm1 }
 0xae8   :  { %v1623_v38 = vsub.f32 1.0, %v1622_v18  ;;  %vm3564_vm9 = vmor %vm1588_vm12, %vm1589_vm13 }
 0xae9   :  { %v1541_v52 = vpop.permute.xlu1 %1540  ;;  %v1585_v3 = vsub.f32 1.0, %v1584_v10  ;;  %v1630_v10 = vand.u32 2147483647, %v3475_v32 }
 0xaea   :  { %v1558_v9 = vadd.f32 %v1541_v52, %v2584_v0  ;;  %v1624_v43 = vmul.f32 %v3488_v45, %v1623_v38  ;;  %v1592_v38 = vand.u32 2147483647, %v3477_v61 }
 0xaeb   :  { %v1586_v55 = vmul.f32 %v3490_v48, %v1585_v3  ;;  %vm1631_vm10 = vcmp.eq.f32.partialorder %v1630_v10, 8.507059e+37 }
 0xaec   :  { %v2081_v7 = vmul.f32 -1.442695, %v1558_v9  ;;  %v1625_v52 = vadd.f32 %v3488_v45, %v1624_v43  ;;  %v1572_v9 = vadd.f32 %v3486_v54, %v1571_v5  ;;  %v1618_v43 = vor.u32 1.1754944e-38, %v1617_v6  ;;  %v1679_v5 = vpop.permute.xlu2 %1678 }
 0xaed   :  { %v1587_v18 = vadd.f32 %v3490_v48, %v1586_v55  ;;  %v1580_v55 = vor.u32 1.1754944e-38, %v1579_v29  ;;  %vm1593_vm12 = vcmp.eq.f32.partialorder %v1592_v38, 8.507059e+37 }
 0xaee   :  { %2329 = vpow2.f32 %v2081_v7 }
 0xaf1   :  { %v1543_v25 = vpop.permute.xlu0 %1542  ;;  %v1681_v27 = vpop.permute.xlu1 %1680 }
 0xaf2   :  { %v1559_v15 = vadd.f32 %v1543_v25, %v2604_v21 }
 0xaf4   :  { %v2330_v22 = vpop.eup %2329  ;;  %v2082_v58 = vmul.f32 -1.442695, %v1559_v15  ;;  %v1577_v15 = vand.u32 2147483647, %v3473_v31  ;;  %v1614_v31 = vsel %vm3522_vm4, %v3483_v1, %v1610_v30  ;;  %v1633_v1 = vor.u32 1.1754944e-38, %v1632_v8 }
 0xaf5   :  { %v3501_v51 = vadd.f32 1.0, %v2330_v22  ;;  %v1595_v22 = vor.u32 1.1754944e-38, %v1594_v44  ;;  %v1619_v6 = vsel %vm3539_vm7, %v1618_v43, %v1614_v31 }
 0xaf6   :  { %vm1578_vm11 = vcmp.eq.f32.partialorder %v1577_v15, 8.507059e+37 }
 0xaf7   :  { %2331 = vrcp.f32 %v3501_v51  ;;  %v1657_v10 = vand.u32 2147483648, %v3501_v51  ;;  %vm1651_vm14 = vweird.f32 %v3501_v51  ;;  %v1655_v14 = vand.u32 2147483647, %v3501_v51 }
 0xaf8   :  { %2333 = vpow2.f32 %v2082_v58  ;;  %v1629_v58 = vsel %vm3547_vm8, %v3488_v45, %v1625_v52  ;;  %v1684_v52 = vmul.f32 %v1679_v5, %v1619_v6 }
 0xaf9   :  { %v1537_v12 = vpop.permute.xlu0 %1536  ;;  %2335 = vtanh.f32 %v1557_v2  ;;  %v1576_v2 = vsel %vm3534_vm6, %v3486_v54, %v1572_v9  ;;  %v1634_v61 = vsel %vm1631_vm10, %v1633_v1, %v1629_v58  ;;  %vm1656_vm0 = vcmp.eq.f32.partialorder %v1655_v14, 8.507059e+37 }
 0xafa   :  { %v1556_v50 = vadd.f32 %v1537_v12, %v2608_v34  ;;  %v1591_v12 = vsel %vm3564_vm9, %v3490_v48, %v1587_v18  ;;  %v1685_v9 = vmul.f32 %v1681_v27, %v1634_v61 }
 0xafb   :  { %v1596_v8 = vsel %vm1593_vm12, %v1595_v22, %v1591_v12  ;;  %v1658_v22 = vor.u32 1.1754944e-38, %v1657_v10 }
 0xafc   :  { %2337 = vtanh.f32 %v1556_v50  ;;  %v1581_v50 = vsel %vm1578_vm11, %v1580_v55, %v1576_v2 }
 0xafd   :  { %v2332_v26 = vpop.eup %2331 }
 0xafe   :  { %v2334_v62 = vpop.eup %2333  ;;  %v1647_v63 = vmul.f32 %v2332_v26, %v3501_v51  ;;  %vm1652_vm13 = vweird.f32 %v2332_v26 }
 0xaff   :  { %v1645_v3 = vadd.f32 1.0, %v2334_v62  ;;  %v2336_v20 = vpop.eup %2335  ;;  %vm1653_vm15 = vmor %vm1651_vm14, %vm1652_vm13 }
 0xb00   :  { %v1648_v45 = vsub.f32 1.0, %v1647_v63  ;;  %v1687_v29 = vmul.f32 %v2336_v20, %v1596_v8 }
 0xb01   :  { %2339 = vrcp.f32 %v1645_v3  ;;  %v1672_v32 = vand.u32 2147483648, %v1645_v3  ;;  %v1670_v58 = vand.u32 2147483647, %v1645_v3  ;;  %vm1666_vm4 = vweird.f32 %v1645_v3 }
 0xb02   :  { %v2338_v54 = vpop.eup %2337  ;;  %v1649_v30 = vmul.f32 %v2332_v26, %v1648_v45  ;;  %v1689_v18 = vadd.f32 %v1687_v29, %v1685_v9 }
 0xb03   :  { %v1686_v7 = vmul.f32 %v2338_v54, %v1581_v50  ;;  %v1673_v44 = vor.u32 1.1754944e-38, %v1672_v32  ;;  %vm1671_vm5 = vcmp.eq.f32.partialorder %v1670_v58, 8.507059e+37 }
 0xb04   :  { %v1650_v62 = vadd.f32 %v2332_v26, %v1649_v30 }
 0xb05   :  { %v3573_v25 = vadd.f32 %v1686_v7, %v1684_v52 }
 0xb06   :  { %v1654_v63 = vsel %vm1653_vm15, %v2332_v26, %v1650_v62 }
 0xb07   :  { %v2340_v48 = vpop.eup %2339  ;;  %2341 = vtanh.f32 %v3573_v25  ;;  %v1659_v20 = vsel %vm1656_vm0, %v1658_v22, %v1654_v63 }
 0xb08   :  { %v1662_v15 = vmul.f32 %v2340_v48, %v1645_v3  ;;  %2343 = vtanh.f32 %v1689_v18  ;;  %vm1667_vm1 = vweird.f32 %v2340_v48 }
 0xb09   :  { %vm1668_vm3 = vmor %vm1666_vm4, %vm1667_vm1 }
 0xb0a   :  { %v1663_v38 = vsub.f32 1.0, %v1662_v15 }
 0xb0c   :  { %v1664_v31 = vmul.f32 %v2340_v48, %v1663_v38 }
 0xb0d   :  { %v2342_v2 = vpop.eup %2341 }
 0xb0e   :  { %v1692_v43 = vmul.f32 %v2342_v2, %v1659_v20  ;;  %v1665_v5 = vadd.f32 %v2340_v48, %v1664_v31  ;;  %v2344_v26 = vpop.eup %2343 }
 0xb10   :  { %1696 = vrot.lane.b32.xlu1 %v1692_v43, %s2414_s2  ;;  %v1669_v51 = vsel %vm1668_vm3, %v2340_v48, %v1665_v5 }
 0xb11   :  { %v1674_v1 = vsel %vm1671_vm5, %v1673_v44, %v1669_v51 }
 0xb12   :  { %v1693_v27 = vmul.f32 %v2344_v26, %v1674_v1 }
 0xb14   :  { %1698 = vrot.lane.b32.xlu0 %v1693_v27, %s2414_s2 }
 0xb82   :  { %v3582_v45 = vpop.permute.xlu1 %1696 }
 0xb86   :  { %v3579_v55 = vpop.permute.xlu0 %1698 }
 0xb87   :  { %1718 = vmatpush.msra.mxu0 %v3579_v55 }
 0xb89   :  { %1719 = vmatpush.msra.mxu0 %v3582_v45 }
 0xb8a   :  { %2083 = vmatmul.msk.f32.vlgmr.msra.gmra.mxu0 %vm152_vm2, %v3410_v56 }
 0xb92   :  { %2084 = vmatmul.msk.f32.gmra.mxu0 %vm152_vm2, %v3417_v60 }
 0xb9a   :  { %2085 = vmatmul.msk.f32.gmra.mxu0 %vm152_vm2, %v3424_v49 }
 0xba2   :  { %2086 = vmatmul.msk.f32.gmra.mxu0 %vm152_vm2, %v3431_v13 }
 0xbaa   :  { %2087 = vmatmul.msk.f32.gmra.mxu0 %vm152_vm2, %v3438_v16 }
 0xbb2   :  { %2088 = vmatmul.msk.f32.gmra.mxu0 %vm152_vm2, %v3445_v17 }
 0xbba   :  { %2089 = vmatmul.msk.f32.gmra.mxu0 %vm152_vm2, %v3452_v47 }
 0xbc2   :  { %2090 = vmatmul.msk.f32.gmra.mxu0 %vm152_vm2, %v3459_v53 }
 0xc07   :  { %v1721_v56 = vpop.f32.mrf.mxu0 }
 0xc08   :  { %1753 = vrot.lane.b32.xlu2 %v1721_v56, %s2415_s23 }
 0xc0f   :  { %v1724_v60 = vpop.f32.mrf.mxu0 }
 0xc10   :  { %1755 = vrot.lane.b32.xlu0 %v1724_v60, %s2415_s23 }
 0xc17   :  { %v1727_v49 = vpop.f32.mrf.mxu0 }
 0xc18   :  { %1757 = vrot.lane.b32.xlu1 %v1727_v49, %s2415_s23 }
 0xc1f   :  { %v1730_v13 = vpop.f32.mrf.mxu0 }
 0xc20   :  { %1759 = vrot.lane.b32.xlu2 %v1730_v13, %s2415_s23 }
 0xc27   :  { %v1733_v3 = vpop.f32.mrf.mxu0 }
 0xc28   :  { %1761 = vrot.lane.b32.xlu2 %v1733_v3, %s2415_s23 }
 0xc2f   :  { %v1736_v16 = vpop.f32.mrf.mxu0 }
 0xc30   :  { %1905 = vrot.lane.b32.xlu2 %v1689_v18, %s2403_s9 }
 0xc37   :  { %v1739_v17 = vpop.f32.mrf.mxu0 }
 0xc38   :  { %1765 = vrot.lane.b32.xlu0 %v1739_v17, %s2415_s23 }
 0xc3f   :  { %v1742_v47 = vpop.f32.mrf.mxu0 }
 0xc40   :  { %1763 = vrot.lane.b32.xlu0 %v1736_v16, %s2415_s23  ;;  %1767 = vrot.lane.b32.xlu1 %v1742_v47, %s2415_s23 }
 0xc48   :  { %1903 = vrot.lane.b32.xlu1 %v3573_v25, %s2403_s9  ;;  %s2416_s9 = smov 114  }
 0xc62   :  { %v1754_v53 = vpop.permute.xlu2 %1753 }
 0xc63   :  { %v1777_v12 = vadd.f32 %v1754_v53, %v2565_v40 }
 0xc65   :  { %v2091_v61 = vmul.f32 -1.442695, %v1777_v12 }
 0xc67   :  { %2345 = vpow2.f32 %v2091_v61 }
 0xc6d   :  { %v2346_v62 = vpop.eup %2345 }
 0xc6e   :  { %v1791_v48 = vadd.f32 1.0, %v2346_v62 }
 0xc70   :  { %vm1798_vm7 = vweird.f32 %v1791_v48  ;;  %v1802_v12 = vand.u32 2147483647, %v1791_v48 }
 0xc72   :  { %vm1803_vm11 = vcmp.eq.f32.partialorder %v1802_v12, 8.507059e+37 }
 0xc7a   :  { %v1760_v50 = vpop.permute.xlu2 %1759 }
 0xc7b   :  { %v1780_v9 = vadd.f32 %v1760_v50, %v2568_v42 }
 0xc7d   :  { %v2094_v8 = vmul.f32 -1.442695, %v1780_v9 }
 0xc82   :  { %v1756_v52 = vpop.permute.xlu0 %1755  ;;  %v1762_v31 = vpop.permute.xlu2 %1761 }
 0xc83   :  { %v1778_v7 = vadd.f32 %v1756_v52, %v2563_v39  ;;  %v1781_v5 = vadd.f32 %v1762_v31, %v2608_v34  ;;  %v1804_v34 = vand.u32 2147483648, %v1791_v48 }
 0xc85   :  { %v2092_v29 = vmul.f32 -1.442695, %v1778_v7  ;;  %v1805_v7 = vor.u32 1.1754944e-38, %v1804_v34 }
 0xc8a   :  { %v1758_v54 = vpop.permute.xlu1 %1757 }
 0xc8b   :  { %v1779_v6 = vadd.f32 %v1758_v54, %v2561_v37 }
 0xc8d   :  { %v2093_v30 = vmul.f32 -1.442695, %v1779_v6 }
 0xc8f   :  { %2347 = vpow2.f32 %v2093_v30 }
 0xc90   :  { %2349 = vpow2.f32 %v2094_v8 }
 0xc91   :  { %2351 = vpow2.f32 %v2092_v29 }
 0xc92   :  { %2353 = vrcp.f32 %v1791_v48 }
 0xc95   :  { %v2348_v25 = vpop.eup %2347 }
 0xc96   :  { %v1829_v40 = vadd.f32 1.0, %v2348_v25  ;;  %v2350_v37 = vpop.eup %2349 }
 0xc97   :  { %v2352_v18 = vpop.eup %2351  ;;  %v3608_v10 = vadd.f32 1.0, %v2350_v37 }
 0xc98   :  { %2355 = vrcp.f32 %v1829_v40  ;;  %v3610_v15 = vadd.f32 1.0, %v2352_v18  ;;  %v2354_v42 = vpop.eup %2353  ;;  %v1842_v16 = vand.u32 2147483648, %v1829_v40  ;;  %vm1836_vm9 = vweird.f32 %v1829_v40 }
 0xc99   :  { %2357 = vrcp.f32 %v3608_v10  ;;  %v1794_v39 = vmul.f32 %v2354_v42, %v1791_v48  ;;  %vm1799_vm2 = vweird.f32 %v2354_v42  ;;  %v1840_v54 = vand.u32 2147483647, %v1829_v40 }
 0xc9a   :  { %2359 = vrcp.f32 %v3610_v15  ;;  %vm3625_vm8 = vmor %vm1798_vm7, %vm1799_vm2  ;;  %v1843_v8 = vor.u32 1.1754944e-38, %v1842_v16  ;;  %vm1851_vm15 = vweird.f32 %v3608_v10  ;;  %v1857_v37 = vand.u32 2147483648, %v3608_v10 }
 0xc9b   :  { %v1795_v22 = vsub.f32 1.0, %v1794_v39  ;;  %vm1841_vm12 = vcmp.eq.f32.partialorder %v1840_v54, 8.507059e+37  ;;  %v1819_v18 = vand.u32 2147483648, %v3610_v15  ;;  %vm1813_vm1 = vweird.f32 %v3610_v15 }
 0xc9d   :  { %v1796_v51 = vmul.f32 %v2354_v42, %v1795_v22 }
 0xc9e   :  { %v2356_v14 = vpop.eup %2355 }
 0xc9f   :  { %v1832_v63 = vmul.f32 %v2356_v14, %v1829_v40  ;;  %v3614_v32 = vpop.eup %2357  ;;  %v1797_v60 = vadd.f32 %v2354_v42, %v1796_v51  ;;  %vm1837_vm6 = vweird.f32 %v2356_v14  ;;  %v1858_v51 = vor.u32 1.1754944e-38, %v1857_v37 }
 0xca0   :  { %v3617_v20 = vpop.eup %2359  ;;  %v1847_v44 = vmul.f32 %v3614_v32, %v3608_v10  ;;  %vm1838_vm10 = vmor %vm1836_vm9, %vm1837_vm6  ;;  %vm1852_vm13 = vweird.f32 %v3614_v32 }
 0xca1   :  { %v1833_v2 = vsub.f32 1.0, %v1832_v63  ;;  %v1809_v26 = vmul.f32 %v3617_v20, %v3610_v15  ;;  %vm1814_vm14 = vweird.f32 %v3617_v20  ;;  %vm3644_vm0 = vmor %vm1851_vm15, %vm1852_vm13  ;;  %v1855_v63 = vand.u32 2147483647, %v3608_v10 }
 0xca2   :  { %v1848_v27 = vsub.f32 1.0, %v1847_v44  ;;  %vm1815_vm4 = vmor %vm1813_vm1, %vm1814_vm14  ;;  %vm1969_vm15 = vcmask 15360  }
 0xca3   :  { %v1834_v1 = vmul.f32 %v2356_v14, %v1833_v2  ;;  %vm1856_vm3 = vcmp.eq.f32.partialorder %v1855_v63, 8.507059e+37 }
 0xca4   :  { %v1849_v50 = vmul.f32 %v3614_v32, %v1848_v27 }
 0xca5   :  { %v1835_v3 = vadd.f32 %v2356_v14, %v1834_v1 }
 0xca6   :  { %v1850_v25 = vadd.f32 %v3614_v32, %v1849_v50 }
 0xca7   :  { %v1839_v52 = vsel %vm1838_vm10, %v2356_v14, %v1835_v3 }
 0xca8   :  { %v1844_v29 = vsel %vm1841_vm12, %v1843_v8, %v1839_v52  ;;  %v1854_v2 = vsel %vm3644_vm0, %v3614_v32, %v1850_v25 }
 0xcaa   :  { %v1766_v38 = vpop.permute.xlu0 %1765 }
 0xcab   :  { %v1783_v58 = vadd.f32 %v1766_v38, %v2584_v0  ;;  %v1810_v0 = vsub.f32 1.0, %v1809_v26  ;;  %v1817_v38 = vand.u32 2147483647, %v3610_v15  ;;  %v1820_v26 = vor.u32 1.1754944e-38, %v1819_v18 }
 0xcac   :  { %v1859_v15 = vsel %vm1856_vm3, %v1858_v51, %v1854_v2 }
 0xcad   :  { %v2095_v43 = vmul.f32 -1.442695, %v1783_v58  ;;  %v1811_v30 = vmul.f32 %v3617_v20, %v1810_v0  ;;  %vm1818_vm5 = vcmp.eq.f32.partialorder %v1817_v38, 8.507059e+37  ;;  %v1906_v0 = vpop.permute.xlu2 %1905 }
 0xcaf   :  { %2361 = vpow2.f32 %v2095_v43  ;;  %v1812_v48 = vadd.f32 %v3617_v20, %v1811_v30 }
 0xcb0   :  { %2363 = vtanh.f32 %v1781_v5 }
 0xcb1   :  { %v1816_v5 = vsel %vm1815_vm4, %v3617_v20, %v1812_v48 }
 0xcb2   :  { %v1768_v56 = vpop.permute.xlu1 %1767  ;;  %v1764_v49 = vpop.permute.xlu0 %1763  ;;  %v1821_v1 = vsel %vm1818_vm5, %v1820_v26, %v1816_v5 }
 0xcb3   :  { %v1784_v13 = vadd.f32 %v1768_v56, %v2604_v21  ;;  %v1782_v61 = vadd.f32 %v1764_v49, %v2610_v35  ;;  %v1801_v21 = vsel %vm3625_vm8, %v2354_v42, %v1797_v60  ;;  %v1910_v49 = vmul.f32 %v1906_v0, %v1859_v15 }
 0xcb4   :  { %v1806_v35 = vsel %vm1803_vm11, %v1805_v7, %v1801_v21 }
 0xcb5   :  { %v2362_v17 = vpop.eup %2361  ;;  %v2096_v47 = vmul.f32 -1.442695, %v1784_v13 }
 0xcb6   :  { %v3629_v6 = vadd.f32 1.0, %v2362_v17  ;;  %v2364_v9 = vpop.eup %2363 }
 0xcb7   :  { %2365 = vpow2.f32 %v2096_v47  ;;  %v1911_v42 = vmul.f32 %v2364_v9, %v1806_v35  ;;  %v577_v35 = vadd.f32 %v2818_v33, %v2677_v41 }
 0xcb8   :  { %2367 = vrcp.f32 %v3629_v6  ;;  %v1882_v27 = vand.u32 2147483648, %v3629_v6  ;;  %v1880_v32 = vand.u32 2147483647, %v3629_v6  ;;  %vm1876_vm6 = vweird.f32 %v3629_v6 }
 0xcb9   :  { %2369 = vtanh.f32 %v1782_v61 }
 0xcba   :  { %v1904_v62 = vpop.permute.xlu1 %1903  ;;  %v1883_v13 = vor.u32 1.1754944e-38, %v1882_v27  ;;  %vm1881_vm8 = vcmp.eq.f32.partialorder %v1880_v32, 8.507059e+37 }
 0xcbb   :  { %v1909_v40 = vmul.f32 %v1904_v62, %v1844_v29  ;;  %v802_v29 = vadd.f32 %v2957_v46, %v577_v35 }
 0xcbd   :  { %v2366_v14 = vpop.eup %2365  ;;  %v1913_v58 = vadd.f32 %v1911_v42, %v1909_v40  ;;  %v1027_v62 = vadd.f32 %v3132_v4, %v802_v29  ;;  %v578_v40 = vadd.f32 %v2815_v36, %v2674_v59 }
 0xcbe   :  { %v2368_v22 = vpop.eup %2367  ;;  %v1870_v31 = vadd.f32 1.0, %v2366_v14 }
 0xcbf   :  { %v1872_v43 = vmul.f32 %v2368_v22, %v3629_v6  ;;  %v2370_v44 = vpop.eup %2369  ;;  %vm1877_vm2 = vweird.f32 %v2368_v22  ;;  %v1252_v25 = vadd.f32 %v3265_v23, %v1027_v62  ;;  %v803_v18 = vadd.f32 %v2954_v57, %v578_v40 }
 0xcc0   :  { %2371 = vrcp.f32 %v1870_v31  ;;  %v1912_v56 = vmul.f32 %v2370_v44, %v1821_v1  ;;  %vm1878_vm7 = vmor %vm1876_vm6, %vm1877_vm2  ;;  %v1897_v61 = vand.u32 2147483648, %v1870_v31  ;;  %v1895_v50 = vand.u32 2147483647, %v1870_v31 }
 0xcc1   :  { %v1873_v10 = vsub.f32 1.0, %v1872_v43  ;;  %2373 = vtanh.f32 %v1913_v58  ;;  %vm1891_vm10 = vweird.f32 %v1870_v31  ;;  %v1477_v48 = vadd.f32 %v3404_v28, %v1252_v25 }
 0xcc2   :  { %v1914_v34 = vadd.f32 %v1912_v56, %v1910_v49  ;;  %v1898_v6 = vor.u32 1.1754944e-38, %v1897_v61  ;;  %vm1896_vm12 = vcmp.eq.f32.partialorder %v1895_v50, 8.507059e+37  ;;  %v1028_v39 = vadd.f32 %v3129_v11, %v803_v18 }
 0xcc3   :  { %v1874_v60 = vmul.f32 %v2368_v22, %v1873_v10  ;;  %v1702_v37 = vadd.f32 %v3582_v45, %v1477_v48 }
 0xcc4   :  { %2375 = vtanh.f32 %v1914_v34  ;;  %v1253_v33 = vadd.f32 %v3262_v24, %v1028_v39 }
 0xcc5   :  { %v1875_v20 = vadd.f32 %v2368_v22, %v1874_v60 }
 0xcc6   :  { %v2372_v3 = vpop.eup %2371  ;;  %v1478_v4 = vadd.f32 %v3401_v19, %v1253_v33 }
 0xcc7   :  { %v1879_v16 = vsel %vm1878_vm7, %v2368_v22, %v1875_v20  ;;  %v2374_v17 = vpop.eup %2373  ;;  %v1887_v47 = vmul.f32 %v2372_v3, %v1870_v31  ;;  %vm1892_vm9 = vweird.f32 %v2372_v3 }
 0xcc8   :  { %v1884_v53 = vsel %vm1881_vm8, %v1883_v13, %v1879_v16  ;;  %vm1893_vm11 = vmor %vm1891_vm10, %vm1892_vm9  ;;  %v1703_v23 = vadd.f32 %v3579_v55, %v1478_v4 }
 0xcc9   :  { %v1917_v12 = vmul.f32 %v2374_v17, %v1884_v53  ;;  %v1888_v54 = vsub.f32 1.0, %v1887_v47 }
 0xcca   :  { %v2376_v9 = vpop.eup %2375 }
 0xccb   :  { %1921 = vrot.lane.b32.xlu0 %v1917_v12, %s2416_s9  ;;  %v1889_v21 = vmul.f32 %v2372_v3, %v1888_v54 }
 0xccd   :  { %v1890_v30 = vadd.f32 %v2372_v3, %v1889_v21 }
 0xccf   :  { %v1894_v52 = vsel %vm1893_vm11, %v2372_v3, %v1890_v30 }
 0xcd0   :  { %v1899_v7 = vsel %vm1896_vm12, %v1898_v6, %v1894_v52 }
 0xcd1   :  { %v1918_v8 = vmul.f32 %v2376_v9, %v1899_v7 }
 0xcd3   :  { %1923 = vrot.lane.b32.xlu1 %v1918_v8, %s2416_s9 }
 0xd3d   :  { %v1922_v42 = vpop.permute.xlu0 %1921 }
 0xd3e   :  { %v1927_v14 = vadd.f32 %v1922_v42, %v1702_v37 }
 0xd40   :  { %v2097_v41 = vmul.f32 -0.125, %v1927_v14 }
 0xd42   :  { %v1933_v46 = vmul.f32 1.442695, %v2097_v41 }
 0xd44   :  { %2377 = vpow2.f32 %v1933_v46 }
 0xd45   :  { %v1924_v28 = vpop.permute.xlu1 %1923 }
 0xd46   :  { %v1928_v63 = vadd.f32 %v1924_v28, %v1703_v23 }
 0xd48   :  { %v2098_v59 = vmul.f32 -0.125, %v1928_v63 }
 0xd4a   :  { %v2378_v36 = vpop.eup %2377  ;;  %v1935_v38 = vmul.f32 1.442695, %v2098_v59 }
 0xd4b   :  { %v1937_v45 = vadd.f32 1.0, %v2378_v36 }
 0xd4d   :  { %2379 = vrcp.f32 %v1937_v45  ;;  %v1950_v24 = vand.u32 2147483648, %v1937_v45  ;;  %v1948_v19 = vand.u32 2147483647, %v1937_v45  ;;  %vm1944_vm14 = vweird.f32 %v1937_v45 }
 0xd4e   :  { %2381 = vpow2.f32 %v1935_v38 }
 0xd4f   :  { %v1951_v55 = vor.u32 1.1754944e-38, %v1950_v24  ;;  %vm1949_vm1 = vcmp.eq.f32.partialorder %v1948_v19, 8.507059e+37 }
 0xd53   :  { %v2380_v57 = vpop.eup %2379 }
 0xd54   :  { %v2382_v22 = vpop.eup %2381  ;;  %v1940_v11 = vmul.f32 %v2380_v57, %v1937_v45  ;;  %vm1945_vm13 = vweird.f32 %v2380_v57 }
 0xd55   :  { %v1938_v31 = vadd.f32 1.0, %v2382_v22  ;;  %vm1946_vm0 = vmor %vm1944_vm14, %vm1945_vm13 }
 0xd56   :  { %v1941_v58 = vsub.f32 1.0, %v1940_v11 }
 0xd57   :  { %2383 = vrcp.f32 %v1938_v31  ;;  %v1965_v15 = vand.u32 2147483648, %v1938_v31  ;;  %v1963_v27 = vand.u32 2147483647, %v1938_v31  ;;  %vm1959_vm3 = vweird.f32 %v1938_v31 }
 0xd58   :  { %v1942_v2 = vmul.f32 %v2380_v57, %v1941_v58 }
 0xd59   :  { %v1966_v60 = vor.u32 1.1754944e-38, %v1965_v15  ;;  %vm1964_vm2 = vcmp.eq.f32.partialorder %v1963_v27, 8.507059e+37 }
 0xd5a   :  { %v1943_v43 = vadd.f32 %v2380_v57, %v1942_v2 }
 0xd5c   :  { %v1947_v5 = vsel %vm1946_vm0, %v2380_v57, %v1943_v43 }
 0xd5d   :  { %v2384_v44 = vpop.eup %2383  ;;  %v1952_v51 = vsel %vm1949_vm1, %v1951_v55, %v1947_v5 }
 0xd5e   :  { %1970 = vst.msk [vmem:[%s3685_s4] sm:$0xff] %vm1969_vm15, %v1952_v51  ;;  %v1955_v26 = vmul.f32 %v2384_v44, %v1938_v31  ;;  %vm1960_vm4 = vweird.f32 %v2384_v44 }
 0xd5f   :  { %vm1961_vm5 = vmor %vm1959_vm3, %vm1960_vm4 }
 0xd60   :  { %v1956_v10 = vsub.f32 1.0, %v1955_v26 }
 0xd62   :  { %v1957_v1 = vmul.f32 %v2384_v44, %v1956_v10 }
 0xd64   :  { %v1958_v56 = vadd.f32 %v2384_v44, %v1957_v1 }
 0xd66   :  { %v1962_v32 = vsel %vm1961_vm5, %v2384_v44, %v1958_v56 }
 0xd67   :  { %v1967_v0 = vsel %vm1964_vm2, %v1966_v60, %v1962_v32 }
 0xd68   :  { %1971 = vst.msk [vmem:[%s3685_s4 + $0x8] sm:$0xff] %vm1969_vm15, %v1967_v0 }

</bundles_post_ra>
